<compile_context>
chip_gen: v7x
topology: tpu7x:2x2x1
jax: 0.10.0
libtpu: 0.0.40
codegen_flags: <defaults>
</compile_context>

<pallas_src>
import math

import jax
import jax.numpy as jnp
from jax.experimental import pallas as pl
from jax.experimental.pallas import tpu as pltpu

N_FREQ = 8                 # frequency levels -> encoder output = 2 * n_dims * N_FREQ
HIDDEN = 64                # tcnn FullyFusedMLP style: n_neurons=64, n_hidden_layers=2
K_ENC = 4 * N_FREQ         # [sin(x f_j), sin(y f_j)]*8, [cos(x f_j), cos(y f_j)]*8
K_FEAT = K_ENC + 3         # + raw x, raw y, constant-1 (bias) rows


# ----------------------------------------------------------------------------
# Kernel
# ----------------------------------------------------------------------------
def _mm(w, x):
    return jnp.dot(w, x, preferred_element_type=jnp.float32)


def _fill_feat(feat_ref, xy):
    """Fill rows [0, 34) of the (K_FEAT, T) scratch slab from (2, T) coords.

    Row layout: rows 2j / 2j+1        = sin(pi*2^j * x) / sin(pi*2^j * y)
                rows 16+2j / 17+2j    = cos(pi*2^j * x) / cos(pi*2^j * y)
                rows 32, 33           = raw x, y           (row 34 = 1, set once)
    Uses one sin + one cos of the base frequency and 7 double-angle steps.
    """
    s = jnp.sin(xy * math.pi)
    c = jnp.cos(xy * math.pi)
    for j in range(N_FREQ):
        if j:
            s, c = 2.0 * s * c, 1.0 - 2.0 * s * s       # angle doubling
        feat_ref[2 * j:2 * j + 2, :] = s
        feat_ref[K_ENC // 2 + 2 * j:K_ENC // 2 + 2 * j + 2, :] = c
    feat_ref[K_ENC:K_ENC + 2, :] = xy


def video_consisten_kernel(xy_ref, b1d_ref, w1d_ref, w2d_ref, w3d_ref,
                           w1r_ref, w2r_ref, w3r_ref, b_ref,
                           out_ref, feat_ref):
    xy = xy_ref[0]                            # (2, T): rows [x, y]
    b1d = b1d_ref[0]                          # (64, 1) per-batch bias (time folded in)
    b = b_ref[...]                            # (64, 4) static bias pack
    b2d = b[:, 0:1]
    b2r = b[:, 1:2]
    b3d = b[0:2, 2:3]
    b3r = b[0:3, 3:4]

    # Constant-1 row (folds Grid2RGB's b1_r; XYT2Grid's matching column is 0).
    feat_ref[K_FEAT - 1:K_FEAT, :] = jnp.full_like(xy[0:1, :], 1.0)

    # ---- XYT2Grid (f32: deform is amplified by pi*2^7 in the next encoder) --
    _fill_feat(feat_ref, xy)
    h = jnp.maximum(_mm(w1d_ref[...], feat_ref[...]) + b1d, 0.0)         # (64, T)
    h = jnp.maximum(_mm(w2d_ref[...], h) + b2d, 0.0)                     # (64, T)
    deform = (_mm(w3d_ref[...], h)[0:2, :] + b3d) * 0.2                  # (2, T)
    dg = deform + xy                                                     # deformed grid

    # ---- Grid2RGB (pre-cast bf16 weights, f32 accumulation) ------------------
    bf = jnp.bfloat16
    _fill_feat(feat_ref, dg)
    h = jnp.maximum(_mm(w1r_ref[...], feat_ref[...].astype(bf)), 0.0)    # bias in ones row
    h = jnp.maximum(_mm(w2r_ref[...], h.astype(bf)) + b2r, 0.0)
    rgb = _mm(w3r_ref[...], h.astype(bf))[0:3, :] + b3r                  # (3, T)

    out_ref[0] = rgb


# ----------------------------------------------------------------------------
# Wrapper-side parameter plumbing (tiny, host/XLA glue)
# ----------------------------------------------------------------------------
def _round_up(n, m):
    return ((n + m - 1) // m) * m


def _w1_kernel_layout(w1, d, last_col):
    """Permute first-layer rows of a (d + 2*N_FREQ*d, H) matrix into the kernel
    feature-row order, transposed to (H, 34), then append `last_col` as the
    constant-1 column -> (H, K_FEAT).  Only coords 0 (x) and 1 (y) are kept."""
    idx = []
    for j in range(N_FREQ):                        # sin(x f_j), sin(y f_j)
        idx += [d + j * 2 * d + 0, d + j * 2 * d + 1]
    for j in range(N_FREQ):                        # cos(x f_j), cos(y f_j)
        idx += [d + j * 2 * d + d + 0, d + j * 2 * d + d + 1]
    idx += [0, 1]                                  # raw x, y
    wk = jnp.transpose(w1[jnp.asarray(idx)])                       # (H, 34)
    return jnp.concatenate([wk, last_col[:, None]], axis=1)        # (H, 35)


def _fold_time_bias(w1_d, b1_d, times):
    """b_eff[b] = b1_d + [t_b, enc(t_b)] @ W1_d[t-rows]  (t is per-batch const)."""
    d = 3
    rows = ([2]
            + [d + j * 2 * d + 2 for j in range(N_FREQ)]           # sin(t f_j)
            + [d + j * 2 * d + d + 2 for j in range(N_FREQ)])      # cos(t f_j)
    w_t = w1_d[jnp.asarray(rows)]                                  # (17, H)
    t = times.reshape(-1, 1).astype(jnp.float32)                   # (B, 1)
    freqs = (math.pi * (2.0 ** jnp.arange(N_FREQ, dtype=jnp.float32)))[None, :]
    t_feat = jnp.concatenate([t, jnp.sin(t * freqs), jnp.cos(t * freqs)], axis=1)
    b_eff = b1_d[None, :] + jnp.dot(t_feat, w_t,
                                    precision=jax.lax.Precision.HIGHEST)
    return b_eff[:, :, None]                                       # (B, H, 1)


def video_consisten_forward(grids, times, params, tile=8192):
    """grids: (B, HW, 2) f32, times: (B, 1, 1) f32 -> (B, 3, HW) f32."""
    B, HW, C = grids.shape
    assert C == 2

    hw_up = _round_up(HW, 128)
    tile = max(128, (tile // 128) * 128)
    tile = min(tile, hw_up)
    if B == 1 and hw_up > 128:
        # keep >= 2 grid steps so v7x megacore can still shard the work
        tile = min(tile, _round_up((hw_up + 1) // 2, 128))
    hwp = _round_up(HW, tile)

    xy = jnp.transpose(grids.astype(jnp.float32), (0, 2, 1))       # (B, 2, HW)
    if hwp != HW:
        xy = jnp.pad(xy, ((0, 0), (0, 0), (0, hwp - HW)))

    bf = jnp.bfloat16
    zeros_col = jnp.zeros((HIDDEN,), jnp.float32)
    w1d = _w1_kernel_layout(params["w1_d"], 3, zeros_col)                       # (64, 35) f32
    w1r = _w1_kernel_layout(params["w1_r"], 2, params["b1_r"]).astype(bf)       # (64, 35) bf16
    w2d = params["w2_d"].T                                                      # (64, 64) f32
    w2r = params["w2_r"].T.astype(bf)                                           # (64, 64) bf16
    w3d = jnp.zeros((8, HIDDEN), jnp.float32).at[0:2].set(params["w3_d"].T)     # (8, 64) f32
    w3r = jnp.zeros((8, HIDDEN), jnp.float32).at[0:3].set(params["w3_r"].T).astype(bf)

    biases = jnp.zeros((HIDDEN, 4), jnp.float32)
    biases = biases.at[:, 0].set(params["b2_d"])
    biases = biases.at[:, 1].set(params["b2_r"])
    biases = biases.at[0:2, 2].set(params["b3_d"])
    biases = biases.at[0:3, 3].set(params["b3_r"])
    b1d_eff = _fold_time_bias(params["w1_d"], params["b1_d"], times)            # (B, 64, 1)

    out = pl.pallas_call(
        video_consisten_kernel,
        out_shape=jax.ShapeDtypeStruct((B, 3, hwp), jnp.float32),
        grid=(B, hwp // tile),
        in_specs=[
            pl.BlockSpec((1, 2, tile), lambda b, ti: (b, 0, ti)),
            pl.BlockSpec((1, HIDDEN, 1), lambda b, ti: (b, 0, 0)),
            pl.BlockSpec((HIDDEN, K_FEAT), lambda b, ti: (0, 0)),
            pl.BlockSpec((HIDDEN, HIDDEN), lambda b, ti: (0, 0)),
            pl.BlockSpec((8, HIDDEN), lambda b, ti: (0, 0)),
            pl.BlockSpec((HIDDEN, K_FEAT), lambda b, ti: (0, 0)),
            pl.BlockSpec((HIDDEN, HIDDEN), lambda b, ti: (0, 0)),
            pl.BlockSpec((8, HIDDEN), lambda b, ti: (0, 0)),
            pl.BlockSpec((HIDDEN, 4), lambda b, ti: (0, 0)),
        ],
        out_specs=pl.BlockSpec((1, 3, tile), lambda b, ti: (b, 0, ti)),
        scratch_shapes=[pltpu.VMEM((K_FEAT, tile), jnp.float32)],
        compiler_params=pltpu.CompilerParams(
            dimension_semantics=("parallel", "parallel"),
            vmem_limit_bytes=32 * 1024 * 1024),
    )(xy, b1d_eff, w1d, w2d, w3d, w1r, w2r, w3r, biases)

    return out[:, :, :HW]


# ----------------------------------------------------------------------------
# Synthetic parameters + pure-JAX reference
# ----------------------------------------------------------------------------
def init_params(key):
    """Deterministic synthetic weights for the two tcnn-style decoders."""
    keys = jax.random.split(key, 6)

    def linear(k, fan_in, fan_out):
        kw, kb = jax.random.split(k)
        w = jax.random.normal(kw, (fan_in, fan_out), jnp.float32) / jnp.sqrt(float(fan_in))
        b = 0.01 * jax.random.normal(kb, (fan_out,), jnp.float32)
        return w, b

    d_in = 3 + 6 * N_FREQ   # cat([xyt, enc3d(xyt)])
    r_in = 2 + 4 * N_FREQ   # cat([grid, enc2d(grid)])

    w1_d, b1_d = linear(keys[0], d_in, HIDDEN)
    w2_d, b2_d = linear(keys[1], HIDDEN, HIDDEN)
    w3_d, b3_d = linear(keys[2], HIDDEN, 2)
    w1_r, b1_r = linear(keys[3], r_in, HIDDEN)
    w2_r, b2_r = linear(keys[4], HIDDEN, HIDDEN)
    w3_r, b3_r = linear(keys[5], HIDDEN, 3)

    return dict(w1_d=w1_d, b1_d=b1_d, w2_d=w2_d, b2_d=b2_d, w3_d=w3_d, b3_d=b3_d,
                w1_r=w1_r, b1_r=b1_r, w2_r=w2_r, b2_r=b2_r, w3_r=w3_r, b3_r=b3_r)


def freq_encode(x, n_freq=N_FREQ):
    """Sinusoidal encoding of the last axis: (..., D) -> (..., 2*n_freq*D)."""
    feats = []
    for j in range(n_freq):
        s = x * (math.pi * (2.0 ** j))
        feats.append(jnp.sin(s))
        feats.append(jnp.cos(s))
    return jnp.concatenate(feats, axis=-1)


def reference_forward(grids, times, p):
    """Pure-JAX f32 reference mirroring VideoConsisten.forward semantics."""
    hp = jax.lax.Precision.HIGHEST
    B, HW, _ = grids.shape
    t = jnp.broadcast_to(times.reshape(B, 1, 1), (B, HW, 1))
    xyt = jnp.concatenate([grids, t], axis=-1)
    h = jax.nn.relu(jnp.dot(jnp.concatenate([xyt, freq_encode(xyt)], -1),
                            p["w1_d"], precision=hp) + p["b1_d"])
    h = jax.nn.relu(jnp.dot(h, p["w2_d"], precision=hp) + p["b2_d"])
    deform = (jnp.dot(h, p["w3_d"], precision=hp) + p["b3_d"]) / 5.0
    dg = deform + grids
    h = jax.nn.relu(jnp.dot(jnp.concatenate([dg, freq_encode(dg)], -1),
                            p["w1_r"], precision=hp) + p["b1_r"])
    h = jax.nn.relu(jnp.dot(h, p["w2_r"], precision=hp) + p["b2_r"])
    rgb = jnp.dot(h, p["w3_r"], precision=hp) + p["b3_r"]
    return jnp.transpose(rgb, (0, 2, 1))


if __name__ == "__main__":
    key = jax.random.PRNGKey(0)
    kp, kg, kt = jax.random.split(key, 3)
    params = init_params(kp)

    B, HW = 2, 200                                       # HW not a tile multiple -> exercises padding
    grids = jax.random.uniform(kg, (B, HW, 2), jnp.float32)   # normalized xy coords
    times = jax.random.uniform(kt, (B, 1, 1), jnp.float32)    # per-batch timestamp

    out = video_consisten_forward(grids, times, params)
    out = jax.block_until_ready(out)

    ref = reference_forward(grids, times, params)
    assert out.shape == (B, 3, HW)
    max_err = float(jnp.max(jnp.abs(out - ref)))
    assert jnp.allclose(out, ref, atol=5e-2, rtol=5e-2), f"max_err={max_err}"

    print("KERNEL_OK")
</pallas_src>

<mosaic_0001>
module attributes {stable_mosaic.version = 11 : i64} {
  func.func @video_consisten_kernel(%arg0: i32, %arg1: i32, %arg2: memref<1x2x256xf32, #tpu.memory_space<vmem>>, %arg3: memref<1x64x1xf32, #tpu.memory_space<vmem>>, %arg4: memref<64x35xf32, #tpu.memory_space<vmem>>, %arg5: memref<64x64xf32, #tpu.memory_space<vmem>>, %arg6: memref<8x64xf32, #tpu.memory_space<vmem>>, %arg7: memref<64x35xbf16, #tpu.memory_space<vmem>>, %arg8: memref<64x64xbf16, #tpu.memory_space<vmem>>, %arg9: memref<8x64xbf16, #tpu.memory_space<vmem>>, %arg10: memref<64x4xf32, #tpu.memory_space<vmem>>, %arg11: memref<1x3x256xf32, #tpu.memory_space<vmem>>, %arg12: memref<35x256xf32, #tpu.memory_space<vmem>>) attributes {dimension_semantics = [#tpu.dimension_semantics<parallel>, #tpu.dimension_semantics<parallel>], iteration_bounds = array<i64: 2, 1>, scalar_prefetch = 0 : i64, scratch_operands = 1 : i64, tpu.core_type = #tpu.core_type<tc>, window_params = [{transform_indices = @transform_0, window_bounds = array<i64: 1, 2, 256>}, {transform_indices = @transform_1, window_bounds = array<i64: 1, 64, 1>}, {pipeline_mode = #tpu.pipeline_mode<synchronous>, transform_indices = @transform_2, window_bounds = array<i64: 64, 35>}, {pipeline_mode = #tpu.pipeline_mode<synchronous>, transform_indices = @transform_3, window_bounds = array<i64: 64, 64>}, {pipeline_mode = #tpu.pipeline_mode<synchronous>, transform_indices = @transform_4, window_bounds = array<i64: 8, 64>}, {pipeline_mode = #tpu.pipeline_mode<synchronous>, transform_indices = @transform_5, window_bounds = array<i64: 64, 35>}, {pipeline_mode = #tpu.pipeline_mode<synchronous>, transform_indices = @transform_6, window_bounds = array<i64: 64, 64>}, {pipeline_mode = #tpu.pipeline_mode<synchronous>, transform_indices = @transform_7, window_bounds = array<i64: 8, 64>}, {pipeline_mode = #tpu.pipeline_mode<synchronous>, transform_indices = @transform_8, window_bounds = array<i64: 64, 4>}, {transform_indices = @transform_9, window_bounds = array<i64: 1, 3, 256>}]} {
    %c0 = arith.constant 0 : index
    %c0_0 = arith.constant 0 : index
    %c0_1 = arith.constant 0 : index
    %0 = vector.load %arg2[%c0, %c0_0, %c0_1] : memref<1x2x256xf32, #tpu.memory_space<vmem>>, vector<1x2x256xf32>
    %1 = vector.shape_cast %0 : vector<1x2x256xf32> to vector<2x256xf32>
    %c0_2 = arith.constant 0 : index
    %c0_3 = arith.constant 0 : index
    %c0_4 = arith.constant 0 : index
    %2 = vector.load %arg3[%c0_2, %c0_3, %c0_4] : memref<1x64x1xf32, #tpu.memory_space<vmem>>, vector<1x64x1xf32>
    %3 = vector.shape_cast %2 : vector<1x64x1xf32> to vector<64x1xf32>
    %c0_5 = arith.constant 0 : index
    %c0_6 = arith.constant 0 : index
    %4 = vector.load %arg10[%c0_5, %c0_6] : memref<64x4xf32, #tpu.memory_space<vmem>>, vector<64x4xf32>
    %5 = vector.extract_strided_slice %4 {offsets = [0, 0], sizes = [64, 1], strides = [1, 1]} : vector<64x4xf32> to vector<64x1xf32>
    %6 = vector.extract_strided_slice %4 {offsets = [0, 1], sizes = [64, 1], strides = [1, 1]} : vector<64x4xf32> to vector<64x1xf32>
    %7 = vector.extract_strided_slice %4 {offsets = [0, 2], sizes = [2, 1], strides = [1, 1]} : vector<64x4xf32> to vector<2x1xf32>
    %8 = vector.extract_strided_slice %4 {offsets = [0, 3], sizes = [3, 1], strides = [1, 1]} : vector<64x4xf32> to vector<3x1xf32>
    %cst = arith.constant 1.000000e+00 : f32
    %9 = vector.broadcast %cst : f32 to vector<1x256xf32>
    %c34 = arith.constant 34 : index
    %c0_7 = arith.constant 0 : index
    %10 = vector.load %arg12[%c34, %c0_7] : memref<35x256xf32, #tpu.memory_space<vmem>>, vector<1x256xf32>
    tpu.vector_store %arg12[%c34, %c0_7], %9 {strides = array<i32>} : memref<35x256xf32, #tpu.memory_space<vmem>>, vector<1x256xf32>,
    %cst_8 = arith.constant 3.14159274 : f32
    %11 = vector.broadcast %cst_8 : f32 to vector<2x256xf32>
    %12 = arith.mulf %1, %11 : vector<2x256xf32>
    %13 = math.sin %12 : vector<2x256xf32>
    %cst_9 = arith.constant 3.14159274 : f32
    %14 = vector.broadcast %cst_9 : f32 to vector<2x256xf32>
    %15 = arith.mulf %1, %14 : vector<2x256xf32>
    %16 = math.cos %15 : vector<2x256xf32>
    %c0_10 = arith.constant 0 : index
    %c0_11 = arith.constant 0 : index
    %17 = vector.load %arg12[%c0_10, %c0_11] : memref<35x256xf32, #tpu.memory_space<vmem>>, vector<2x256xf32>
    tpu.vector_store %arg12[%c0_10, %c0_11], %13 {strides = array<i32>} : memref<35x256xf32, #tpu.memory_space<vmem>>, vector<2x256xf32>,
    %c16 = arith.constant 16 : index
    %c0_12 = arith.constant 0 : index
    %18 = vector.load %arg12[%c16, %c0_12] : memref<35x256xf32, #tpu.memory_space<vmem>>, vector<2x256xf32>
    tpu.vector_store %arg12[%c16, %c0_12], %16 {strides = array<i32>} : memref<35x256xf32, #tpu.memory_space<vmem>>, vector<2x256xf32>,
    %cst_13 = arith.constant 2.000000e+00 : f32
    %19 = vector.broadcast %cst_13 : f32 to vector<2x256xf32>
    %20 = arith.mulf %19, %13 : vector<2x256xf32>
    %21 = arith.mulf %20, %16 : vector<2x256xf32>
    %cst_14 = arith.constant 2.000000e+00 : f32
    %22 = vector.broadcast %cst_14 : f32 to vector<2x256xf32>
    %23 = arith.mulf %22, %13 : vector<2x256xf32>
    %24 = arith.mulf %23, %13 : vector<2x256xf32>
    %cst_15 = arith.constant 1.000000e+00 : f32
    %25 = vector.broadcast %cst_15 : f32 to vector<2x256xf32>
    %26 = arith.subf %25, %24 : vector<2x256xf32>
    %c2 = arith.constant 2 : index
    %c0_16 = arith.constant 0 : index
    %27 = vector.load %arg12[%c2, %c0_16] : memref<35x256xf32, #tpu.memory_space<vmem>>, vector<2x256xf32>
    tpu.vector_store %arg12[%c2, %c0_16], %21 {strides = array<i32>} : memref<35x256xf32, #tpu.memory_space<vmem>>, vector<2x256xf32>,
    %c18 = arith.constant 18 : index
    %c0_17 = arith.constant 0 : index
    %28 = vector.load %arg12[%c18, %c0_17] : memref<35x256xf32, #tpu.memory_space<vmem>>, vector<2x256xf32>
    tpu.vector_store %arg12[%c18, %c0_17], %26 {strides = array<i32>} : memref<35x256xf32, #tpu.memory_space<vmem>>, vector<2x256xf32>,
    %cst_18 = arith.constant 2.000000e+00 : f32
    %29 = vector.broadcast %cst_18 : f32 to vector<2x256xf32>
    %30 = arith.mulf %29, %21 : vector<2x256xf32>
    %31 = arith.mulf %30, %26 : vector<2x256xf32>
    %cst_19 = arith.constant 2.000000e+00 : f32
    %32 = vector.broadcast %cst_19 : f32 to vector<2x256xf32>
    %33 = arith.mulf %32, %21 : vector<2x256xf32>
    %34 = arith.mulf %33, %21 : vector<2x256xf32>
    %cst_20 = arith.constant 1.000000e+00 : f32
    %35 = vector.broadcast %cst_20 : f32 to vector<2x256xf32>
    %36 = arith.subf %35, %34 : vector<2x256xf32>
    %c4 = arith.constant 4 : index
    %c0_21 = arith.constant 0 : index
    %37 = vector.load %arg12[%c4, %c0_21] : memref<35x256xf32, #tpu.memory_space<vmem>>, vector<2x256xf32>
    tpu.vector_store %arg12[%c4, %c0_21], %31 {strides = array<i32>} : memref<35x256xf32, #tpu.memory_space<vmem>>, vector<2x256xf32>,
    %c20 = arith.constant 20 : index
    %c0_22 = arith.constant 0 : index
    %38 = vector.load %arg12[%c20, %c0_22] : memref<35x256xf32, #tpu.memory_space<vmem>>, vector<2x256xf32>
    tpu.vector_store %arg12[%c20, %c0_22], %36 {strides = array<i32>} : memref<35x256xf32, #tpu.memory_space<vmem>>, vector<2x256xf32>,
    %cst_23 = arith.constant 2.000000e+00 : f32
    %39 = vector.broadcast %cst_23 : f32 to vector<2x256xf32>
    %40 = arith.mulf %39, %31 : vector<2x256xf32>
    %41 = arith.mulf %40, %36 : vector<2x256xf32>
    %cst_24 = arith.constant 2.000000e+00 : f32
    %42 = vector.broadcast %cst_24 : f32 to vector<2x256xf32>
    %43 = arith.mulf %42, %31 : vector<2x256xf32>
    %44 = arith.mulf %43, %31 : vector<2x256xf32>
    %cst_25 = arith.constant 1.000000e+00 : f32
    %45 = vector.broadcast %cst_25 : f32 to vector<2x256xf32>
    %46 = arith.subf %45, %44 : vector<2x256xf32>
    %c6 = arith.constant 6 : index
    %c0_26 = arith.constant 0 : index
    %47 = vector.load %arg12[%c6, %c0_26] : memref<35x256xf32, #tpu.memory_space<vmem>>, vector<2x256xf32>
    tpu.vector_store %arg12[%c6, %c0_26], %41 {strides = array<i32>} : memref<35x256xf32, #tpu.memory_space<vmem>>, vector<2x256xf32>,
    %c22 = arith.constant 22 : index
    %c0_27 = arith.constant 0 : index
    %48 = vector.load %arg12[%c22, %c0_27] : memref<35x256xf32, #tpu.memory_space<vmem>>, vector<2x256xf32>
    tpu.vector_store %arg12[%c22, %c0_27], %46 {strides = array<i32>} : memref<35x256xf32, #tpu.memory_space<vmem>>, vector<2x256xf32>,
    %cst_28 = arith.constant 2.000000e+00 : f32
    %49 = vector.broadcast %cst_28 : f32 to vector<2x256xf32>
    %50 = arith.mulf %49, %41 : vector<2x256xf32>
    %51 = arith.mulf %50, %46 : vector<2x256xf32>
    %cst_29 = arith.constant 2.000000e+00 : f32
    %52 = vector.broadcast %cst_29 : f32 to vector<2x256xf32>
    %53 = arith.mulf %52, %41 : vector<2x256xf32>
    %54 = arith.mulf %53, %41 : vector<2x256xf32>
    %cst_30 = arith.constant 1.000000e+00 : f32
    %55 = vector.broadcast %cst_30 : f32 to vector<2x256xf32>
    %56 = arith.subf %55, %54 : vector<2x256xf32>
    %c8 = arith.constant 8 : index
    %c0_31 = arith.constant 0 : index
    %57 = vector.load %arg12[%c8, %c0_31] : memref<35x256xf32, #tpu.memory_space<vmem>>, vector<2x256xf32>
    tpu.vector_store %arg12[%c8, %c0_31], %51 {strides = array<i32>} : memref<35x256xf32, #tpu.memory_space<vmem>>, vector<2x256xf32>,
    %c24 = arith.constant 24 : index
    %c0_32 = arith.constant 0 : index
    %58 = vector.load %arg12[%c24, %c0_32] : memref<35x256xf32, #tpu.memory_space<vmem>>, vector<2x256xf32>
    tpu.vector_store %arg12[%c24, %c0_32], %56 {strides = array<i32>} : memref<35x256xf32, #tpu.memory_space<vmem>>, vector<2x256xf32>,
    %cst_33 = arith.constant 2.000000e+00 : f32
    %59 = vector.broadcast %cst_33 : f32 to vector<2x256xf32>
    %60 = arith.mulf %59, %51 : vector<2x256xf32>
    %61 = arith.mulf %60, %56 : vector<2x256xf32>
    %cst_34 = arith.constant 2.000000e+00 : f32
    %62 = vector.broadcast %cst_34 : f32 to vector<2x256xf32>
    %63 = arith.mulf %62, %51 : vector<2x256xf32>
    %64 = arith.mulf %63, %51 : vector<2x256xf32>
    %cst_35 = arith.constant 1.000000e+00 : f32
    %65 = vector.broadcast %cst_35 : f32 to vector<2x256xf32>
    %66 = arith.subf %65, %64 : vector<2x256xf32>
    %c10 = arith.constant 10 : index
    %c0_36 = arith.constant 0 : index
    %67 = vector.load %arg12[%c10, %c0_36] : memref<35x256xf32, #tpu.memory_space<vmem>>, vector<2x256xf32>
    tpu.vector_store %arg12[%c10, %c0_36], %61 {strides = array<i32>} : memref<35x256xf32, #tpu.memory_space<vmem>>, vector<2x256xf32>,
    %c26 = arith.constant 26 : index
    %c0_37 = arith.constant 0 : index
    %68 = vector.load %arg12[%c26, %c0_37] : memref<35x256xf32, #tpu.memory_space<vmem>>, vector<2x256xf32>
    tpu.vector_store %arg12[%c26, %c0_37], %66 {strides = array<i32>} : memref<35x256xf32, #tpu.memory_space<vmem>>, vector<2x256xf32>,
    %cst_38 = arith.constant 2.000000e+00 : f32
    %69 = vector.broadcast %cst_38 : f32 to vector<2x256xf32>
    %70 = arith.mulf %69, %61 : vector<2x256xf32>
    %71 = arith.mulf %70, %66 : vector<2x256xf32>
    %cst_39 = arith.constant 2.000000e+00 : f32
    %72 = vector.broadcast %cst_39 : f32 to vector<2x256xf32>
    %73 = arith.mulf %72, %61 : vector<2x256xf32>
    %74 = arith.mulf %73, %61 : vector<2x256xf32>
    %cst_40 = arith.constant 1.000000e+00 : f32
    %75 = vector.broadcast %cst_40 : f32 to vector<2x256xf32>
    %76 = arith.subf %75, %74 : vector<2x256xf32>
    %c12 = arith.constant 12 : index
    %c0_41 = arith.constant 0 : index
    %77 = vector.load %arg12[%c12, %c0_41] : memref<35x256xf32, #tpu.memory_space<vmem>>, vector<2x256xf32>
    tpu.vector_store %arg12[%c12, %c0_41], %71 {strides = array<i32>} : memref<35x256xf32, #tpu.memory_space<vmem>>, vector<2x256xf32>,
    %c28 = arith.constant 28 : index
    %c0_42 = arith.constant 0 : index
    %78 = vector.load %arg12[%c28, %c0_42] : memref<35x256xf32, #tpu.memory_space<vmem>>, vector<2x256xf32>
    tpu.vector_store %arg12[%c28, %c0_42], %76 {strides = array<i32>} : memref<35x256xf32, #tpu.memory_space<vmem>>, vector<2x256xf32>,
    %cst_43 = arith.constant 2.000000e+00 : f32
    %79 = vector.broadcast %cst_43 : f32 to vector<2x256xf32>
    %80 = arith.mulf %79, %71 : vector<2x256xf32>
    %81 = arith.mulf %80, %76 : vector<2x256xf32>
    %cst_44 = arith.constant 2.000000e+00 : f32
    %82 = vector.broadcast %cst_44 : f32 to vector<2x256xf32>
    %83 = arith.mulf %82, %71 : vector<2x256xf32>
    %84 = arith.mulf %83, %71 : vector<2x256xf32>
    %cst_45 = arith.constant 1.000000e+00 : f32
    %85 = vector.broadcast %cst_45 : f32 to vector<2x256xf32>
    %86 = arith.subf %85, %84 : vector<2x256xf32>
    %c14 = arith.constant 14 : index
    %c0_46 = arith.constant 0 : index
    %87 = vector.load %arg12[%c14, %c0_46] : memref<35x256xf32, #tpu.memory_space<vmem>>, vector<2x256xf32>
    tpu.vector_store %arg12[%c14, %c0_46], %81 {strides = array<i32>} : memref<35x256xf32, #tpu.memory_space<vmem>>, vector<2x256xf32>,
    %c30 = arith.constant 30 : index
    %c0_47 = arith.constant 0 : index
    %88 = vector.load %arg12[%c30, %c0_47] : memref<35x256xf32, #tpu.memory_space<vmem>>, vector<2x256xf32>
    tpu.vector_store %arg12[%c30, %c0_47], %86 {strides = array<i32>} : memref<35x256xf32, #tpu.memory_space<vmem>>, vector<2x256xf32>,
    %c32 = arith.constant 32 : index
    %c0_48 = arith.constant 0 : index
    %89 = vector.load %arg12[%c32, %c0_48] : memref<35x256xf32, #tpu.memory_space<vmem>>, vector<2x256xf32>
    tpu.vector_store %arg12[%c32, %c0_48], %1 {strides = array<i32>} : memref<35x256xf32, #tpu.memory_space<vmem>>, vector<2x256xf32>,
    %c0_49 = arith.constant 0 : index
    %c0_50 = arith.constant 0 : index
    %90 = vector.load %arg4[%c0_49, %c0_50] : memref<64x35xf32, #tpu.memory_space<vmem>>, vector<64x35xf32>
    %c0_51 = arith.constant 0 : index
    %c0_52 = arith.constant 0 : index
    %91 = vector.load %arg12[%c0_51, %c0_52] : memref<35x256xf32, #tpu.memory_space<vmem>>, vector<35x256xf32>
    %cst_53 = arith.constant dense<0.000000e+00> : vector<64x256xf32>
    %92 = tpu.matmul %90, %91, %cst_53 {dimension_numbers = #tpu.dot_dimension_numbers<[1], [0], [0], [1], [0, 0, 1, 1], [], []>} : vector<64x35xf32>, vector<35x256xf32>, vector<64x256xf32> -> vector<64x256xf32>
    %93 = vector.broadcast %3 : vector<64x1xf32> to vector<64x256xf32>
    %94 = arith.addf %92, %93 : vector<64x256xf32>
    %cst_54 = arith.constant 0.000000e+00 : f32
    %95 = vector.broadcast %cst_54 : f32 to vector<64x256xf32>
    %96 = arith.maximumf %94, %95 : vector<64x256xf32>
    %c0_55 = arith.constant 0 : index
    %c0_56 = arith.constant 0 : index
    %97 = vector.load %arg5[%c0_55, %c0_56] : memref<64x64xf32, #tpu.memory_space<vmem>>, vector<64x64xf32>
    %cst_57 = arith.constant dense<0.000000e+00> : vector<64x256xf32>
    %98 = tpu.matmul %97, %96, %cst_57 {dimension_numbers = #tpu.dot_dimension_numbers<[1], [0], [0], [1], [0, 0, 1, 1], [], []>} : vector<64x64xf32>, vector<64x256xf32>, vector<64x256xf32> -> vector<64x256xf32>
    %99 = vector.broadcast %5 : vector<64x1xf32> to vector<64x256xf32>
    %100 = arith.addf %98, %99 : vector<64x256xf32>
    %cst_58 = arith.constant 0.000000e+00 : f32
    %101 = vector.broadcast %cst_58 : f32 to vector<64x256xf32>
    %102 = arith.maximumf %100, %101 : vector<64x256xf32>
    %c0_59 = arith.constant 0 : index
    %c0_60 = arith.constant 0 : index
    %103 = vector.load %arg6[%c0_59, %c0_60] : memref<8x64xf32, #tpu.memory_space<vmem>>, vector<8x64xf32>
    %cst_61 = arith.constant dense<0.000000e+00> : vector<8x256xf32>
    %104 = tpu.matmul %103, %102, %cst_61 {dimension_numbers = #tpu.dot_dimension_numbers<[1], [0], [0], [1], [0, 0, 1, 1], [], []>} : vector<8x64xf32>, vector<64x256xf32>, vector<8x256xf32> -> vector<8x256xf32>
    %105 = vector.extract_strided_slice %104 {offsets = [0, 0], sizes = [2, 256], strides = [1, 1]} : vector<8x256xf32> to vector<2x256xf32>
    %106 = vector.broadcast %7 : vector<2x1xf32> to vector<2x256xf32>
    %107 = arith.addf %105, %106 : vector<2x256xf32>
    %cst_62 = arith.constant 2.000000e-01 : f32
    %108 = vector.broadcast %cst_62 : f32 to vector<2x256xf32>
    %109 = arith.mulf %107, %108 : vector<2x256xf32>
    %110 = arith.addf %109, %1 : vector<2x256xf32>
    %cst_63 = arith.constant 3.14159274 : f32
    %111 = vector.broadcast %cst_63 : f32 to vector<2x256xf32>
    %112 = arith.mulf %110, %111 : vector<2x256xf32>
    %113 = math.sin %112 : vector<2x256xf32>
    %cst_64 = arith.constant 3.14159274 : f32
    %114 = vector.broadcast %cst_64 : f32 to vector<2x256xf32>
    %115 = arith.mulf %110, %114 : vector<2x256xf32>
    %116 = math.cos %115 : vector<2x256xf32>
    %c0_65 = arith.constant 0 : index
    %c0_66 = arith.constant 0 : index
    %117 = vector.load %arg12[%c0_65, %c0_66] : memref<35x256xf32, #tpu.memory_space<vmem>>, vector<2x256xf32>
    tpu.vector_store %arg12[%c0_65, %c0_66], %113 {strides = array<i32>} : memref<35x256xf32, #tpu.memory_space<vmem>>, vector<2x256xf32>,
    %c16_67 = arith.constant 16 : index
    %c0_68 = arith.constant 0 : index
    %118 = vector.load %arg12[%c16_67, %c0_68] : memref<35x256xf32, #tpu.memory_space<vmem>>, vector<2x256xf32>
    tpu.vector_store %arg12[%c16_67, %c0_68], %116 {strides = array<i32>} : memref<35x256xf32, #tpu.memory_space<vmem>>, vector<2x256xf32>,
    %cst_69 = arith.constant 2.000000e+00 : f32
    %119 = vector.broadcast %cst_69 : f32 to vector<2x256xf32>
    %120 = arith.mulf %119, %113 : vector<2x256xf32>
    %121 = arith.mulf %120, %116 : vector<2x256xf32>
    %cst_70 = arith.constant 2.000000e+00 : f32
    %122 = vector.broadcast %cst_70 : f32 to vector<2x256xf32>
    %123 = arith.mulf %122, %113 : vector<2x256xf32>
    %124 = arith.mulf %123, %113 : vector<2x256xf32>
    %cst_71 = arith.constant 1.000000e+00 : f32
    %125 = vector.broadcast %cst_71 : f32 to vector<2x256xf32>
    %126 = arith.subf %125, %124 : vector<2x256xf32>
    %c2_72 = arith.constant 2 : index
    %c0_73 = arith.constant 0 : index
    %127 = vector.load %arg12[%c2_72, %c0_73] : memref<35x256xf32, #tpu.memory_space<vmem>>, vector<2x256xf32>
    tpu.vector_store %arg12[%c2_72, %c0_73], %121 {strides = array<i32>} : memref<35x256xf32, #tpu.memory_space<vmem>>, vector<2x256xf32>,
    %c18_74 = arith.constant 18 : index
    %c0_75 = arith.constant 0 : index
    %128 = vector.load %arg12[%c18_74, %c0_75] : memref<35x256xf32, #tpu.memory_space<vmem>>, vector<2x256xf32>
    tpu.vector_store %arg12[%c18_74, %c0_75], %126 {strides = array<i32>} : memref<35x256xf32, #tpu.memory_space<vmem>>, vector<2x256xf32>,
    %cst_76 = arith.constant 2.000000e+00 : f32
    %129 = vector.broadcast %cst_76 : f32 to vector<2x256xf32>
    %130 = arith.mulf %129, %121 : vector<2x256xf32>
    %131 = arith.mulf %130, %126 : vector<2x256xf32>
    %cst_77 = arith.constant 2.000000e+00 : f32
    %132 = vector.broadcast %cst_77 : f32 to vector<2x256xf32>
    %133 = arith.mulf %132, %121 : vector<2x256xf32>
    %134 = arith.mulf %133, %121 : vector<2x256xf32>
    %cst_78 = arith.constant 1.000000e+00 : f32
    %135 = vector.broadcast %cst_78 : f32 to vector<2x256xf32>
    %136 = arith.subf %135, %134 : vector<2x256xf32>
    %c4_79 = arith.constant 4 : index
    %c0_80 = arith.constant 0 : index
    %137 = vector.load %arg12[%c4_79, %c0_80] : memref<35x256xf32, #tpu.memory_space<vmem>>, vector<2x256xf32>
    tpu.vector_store %arg12[%c4_79, %c0_80], %131 {strides = array<i32>} : memref<35x256xf32, #tpu.memory_space<vmem>>, vector<2x256xf32>,
    %c20_81 = arith.constant 20 : index
    %c0_82 = arith.constant 0 : index
    %138 = vector.load %arg12[%c20_81, %c0_82] : memref<35x256xf32, #tpu.memory_space<vmem>>, vector<2x256xf32>
    tpu.vector_store %arg12[%c20_81, %c0_82], %136 {strides = array<i32>} : memref<35x256xf32, #tpu.memory_space<vmem>>, vector<2x256xf32>,
    %cst_83 = arith.constant 2.000000e+00 : f32
    %139 = vector.broadcast %cst_83 : f32 to vector<2x256xf32>
    %140 = arith.mulf %139, %131 : vector<2x256xf32>
    %141 = arith.mulf %140, %136 : vector<2x256xf32>
    %cst_84 = arith.constant 2.000000e+00 : f32
    %142 = vector.broadcast %cst_84 : f32 to vector<2x256xf32>
    %143 = arith.mulf %142, %131 : vector<2x256xf32>
    %144 = arith.mulf %143, %131 : vector<2x256xf32>
    %cst_85 = arith.constant 1.000000e+00 : f32
    %145 = vector.broadcast %cst_85 : f32 to vector<2x256xf32>
    %146 = arith.subf %145, %144 : vector<2x256xf32>
    %c6_86 = arith.constant 6 : index
    %c0_87 = arith.constant 0 : index
    %147 = vector.load %arg12[%c6_86, %c0_87] : memref<35x256xf32, #tpu.memory_space<vmem>>, vector<2x256xf32>
    tpu.vector_store %arg12[%c6_86, %c0_87], %141 {strides = array<i32>} : memref<35x256xf32, #tpu.memory_space<vmem>>, vector<2x256xf32>,
    %c22_88 = arith.constant 22 : index
    %c0_89 = arith.constant 0 : index
    %148 = vector.load %arg12[%c22_88, %c0_89] : memref<35x256xf32, #tpu.memory_space<vmem>>, vector<2x256xf32>
    tpu.vector_store %arg12[%c22_88, %c0_89], %146 {strides = array<i32>} : memref<35x256xf32, #tpu.memory_space<vmem>>, vector<2x256xf32>,
    %cst_90 = arith.constant 2.000000e+00 : f32
    %149 = vector.broadcast %cst_90 : f32 to vector<2x256xf32>
    %150 = arith.mulf %149, %141 : vector<2x256xf32>
    %151 = arith.mulf %150, %146 : vector<2x256xf32>
    %cst_91 = arith.constant 2.000000e+00 : f32
    %152 = vector.broadcast %cst_91 : f32 to vector<2x256xf32>
    %153 = arith.mulf %152, %141 : vector<2x256xf32>
    %154 = arith.mulf %153, %141 : vector<2x256xf32>
    %cst_92 = arith.constant 1.000000e+00 : f32
    %155 = vector.broadcast %cst_92 : f32 to vector<2x256xf32>
    %156 = arith.subf %155, %154 : vector<2x256xf32>
    %c8_93 = arith.constant 8 : index
    %c0_94 = arith.constant 0 : index
    %157 = vector.load %arg12[%c8_93, %c0_94] : memref<35x256xf32, #tpu.memory_space<vmem>>, vector<2x256xf32>
    tpu.vector_store %arg12[%c8_93, %c0_94], %151 {strides = array<i32>} : memref<35x256xf32, #tpu.memory_space<vmem>>, vector<2x256xf32>,
    %c24_95 = arith.constant 24 : index
    %c0_96 = arith.constant 0 : index
    %158 = vector.load %arg12[%c24_95, %c0_96] : memref<35x256xf32, #tpu.memory_space<vmem>>, vector<2x256xf32>
    tpu.vector_store %arg12[%c24_95, %c0_96], %156 {strides = array<i32>} : memref<35x256xf32, #tpu.memory_space<vmem>>, vector<2x256xf32>,
    %cst_97 = arith.constant 2.000000e+00 : f32
    %159 = vector.broadcast %cst_97 : f32 to vector<2x256xf32>
    %160 = arith.mulf %159, %151 : vector<2x256xf32>
    %161 = arith.mulf %160, %156 : vector<2x256xf32>
    %cst_98 = arith.constant 2.000000e+00 : f32
    %162 = vector.broadcast %cst_98 : f32 to vector<2x256xf32>
    %163 = arith.mulf %162, %151 : vector<2x256xf32>
    %164 = arith.mulf %163, %151 : vector<2x256xf32>
    %cst_99 = arith.constant 1.000000e+00 : f32
    %165 = vector.broadcast %cst_99 : f32 to vector<2x256xf32>
    %166 = arith.subf %165, %164 : vector<2x256xf32>
    %c10_100 = arith.constant 10 : index
    %c0_101 = arith.constant 0 : index
    %167 = vector.load %arg12[%c10_100, %c0_101] : memref<35x256xf32, #tpu.memory_space<vmem>>, vector<2x256xf32>
    tpu.vector_store %arg12[%c10_100, %c0_101], %161 {strides = array<i32>} : memref<35x256xf32, #tpu.memory_space<vmem>>, vector<2x256xf32>,
    %c26_102 = arith.constant 26 : index
    %c0_103 = arith.constant 0 : index
    %168 = vector.load %arg12[%c26_102, %c0_103] : memref<35x256xf32, #tpu.memory_space<vmem>>, vector<2x256xf32>
    tpu.vector_store %arg12[%c26_102, %c0_103], %166 {strides = array<i32>} : memref<35x256xf32, #tpu.memory_space<vmem>>, vector<2x256xf32>,
    %cst_104 = arith.constant 2.000000e+00 : f32
    %169 = vector.broadcast %cst_104 : f32 to vector<2x256xf32>
    %170 = arith.mulf %169, %161 : vector<2x256xf32>
    %171 = arith.mulf %170, %166 : vector<2x256xf32>
    %cst_105 = arith.constant 2.000000e+00 : f32
    %172 = vector.broadcast %cst_105 : f32 to vector<2x256xf32>
    %173 = arith.mulf %172, %161 : vector<2x256xf32>
    %174 = arith.mulf %173, %161 : vector<2x256xf32>
    %cst_106 = arith.constant 1.000000e+00 : f32
    %175 = vector.broadcast %cst_106 : f32 to vector<2x256xf32>
    %176 = arith.subf %175, %174 : vector<2x256xf32>
    %c12_107 = arith.constant 12 : index
    %c0_108 = arith.constant 0 : index
    %177 = vector.load %arg12[%c12_107, %c0_108] : memref<35x256xf32, #tpu.memory_space<vmem>>, vector<2x256xf32>
    tpu.vector_store %arg12[%c12_107, %c0_108], %171 {strides = array<i32>} : memref<35x256xf32, #tpu.memory_space<vmem>>, vector<2x256xf32>,
    %c28_109 = arith.constant 28 : index
    %c0_110 = arith.constant 0 : index
    %178 = vector.load %arg12[%c28_109, %c0_110] : memref<35x256xf32, #tpu.memory_space<vmem>>, vector<2x256xf32>
    tpu.vector_store %arg12[%c28_109, %c0_110], %176 {strides = array<i32>} : memref<35x256xf32, #tpu.memory_space<vmem>>, vector<2x256xf32>,
    %cst_111 = arith.constant 2.000000e+00 : f32
    %179 = vector.broadcast %cst_111 : f32 to vector<2x256xf32>
    %180 = arith.mulf %179, %171 : vector<2x256xf32>
    %181 = arith.mulf %180, %176 : vector<2x256xf32>
    %cst_112 = arith.constant 2.000000e+00 : f32
    %182 = vector.broadcast %cst_112 : f32 to vector<2x256xf32>
    %183 = arith.mulf %182, %171 : vector<2x256xf32>
    %184 = arith.mulf %183, %171 : vector<2x256xf32>
    %cst_113 = arith.constant 1.000000e+00 : f32
    %185 = vector.broadcast %cst_113 : f32 to vector<2x256xf32>
    %186 = arith.subf %185, %184 : vector<2x256xf32>
    %c14_114 = arith.constant 14 : index
    %c0_115 = arith.constant 0 : index
    %187 = vector.load %arg12[%c14_114, %c0_115] : memref<35x256xf32, #tpu.memory_space<vmem>>, vector<2x256xf32>
    tpu.vector_store %arg12[%c14_114, %c0_115], %181 {strides = array<i32>} : memref<35x256xf32, #tpu.memory_space<vmem>>, vector<2x256xf32>,
    %c30_116 = arith.constant 30 : index
    %c0_117 = arith.constant 0 : index
    %188 = vector.load %arg12[%c30_116, %c0_117] : memref<35x256xf32, #tpu.memory_space<vmem>>, vector<2x256xf32>
    tpu.vector_store %arg12[%c30_116, %c0_117], %186 {strides = array<i32>} : memref<35x256xf32, #tpu.memory_space<vmem>>, vector<2x256xf32>,
    %c32_118 = arith.constant 32 : index
    %c0_119 = arith.constant 0 : index
    %189 = vector.load %arg12[%c32_118, %c0_119] : memref<35x256xf32, #tpu.memory_space<vmem>>, vector<2x256xf32>
    tpu.vector_store %arg12[%c32_118, %c0_119], %110 {strides = array<i32>} : memref<35x256xf32, #tpu.memory_space<vmem>>, vector<2x256xf32>,
    %c0_120 = arith.constant 0 : index
    %c0_121 = arith.constant 0 : index
    %190 = vector.load %arg7[%c0_120, %c0_121] : memref<64x35xbf16, #tpu.memory_space<vmem>>, vector<64x35xbf16>
    %c0_122 = arith.constant 0 : index
    %c0_123 = arith.constant 0 : index
    %191 = vector.load %arg12[%c0_122, %c0_123] : memref<35x256xf32, #tpu.memory_space<vmem>>, vector<35x256xf32>
    %192 = arith.truncf %191 : vector<35x256xf32> to vector<35x256xbf16>
    %cst_124 = arith.constant dense<0.000000e+00> : vector<64x256xf32>
    %193 = tpu.matmul %190, %192, %cst_124 {dimension_numbers = #tpu.dot_dimension_numbers<[1], [0], [0], [1], [0, 0, 1, 1], [], []>} : vector<64x35xbf16>, vector<35x256xbf16>, vector<64x256xf32> -> vector<64x256xf32>
    %cst_125 = arith.constant 0.000000e+00 : f32
    %194 = vector.broadcast %cst_125 : f32 to vector<64x256xf32>
    %195 = arith.maximumf %193, %194 : vector<64x256xf32>
    %c0_126 = arith.constant 0 : index
    %c0_127 = arith.constant 0 : index
    %196 = vector.load %arg8[%c0_126, %c0_127] : memref<64x64xbf16, #tpu.memory_space<vmem>>, vector<64x64xbf16>
    %197 = arith.truncf %195 : vector<64x256xf32> to vector<64x256xbf16>
    %cst_128 = arith.constant dense<0.000000e+00> : vector<64x256xf32>
    %198 = tpu.matmul %196, %197, %cst_128 {dimension_numbers = #tpu.dot_dimension_numbers<[1], [0], [0], [1], [0, 0, 1, 1], [], []>} : vector<64x64xbf16>, vector<64x256xbf16>, vector<64x256xf32> -> vector<64x256xf32>
    %199 = vector.broadcast %6 : vector<64x1xf32> to vector<64x256xf32>
    %200 = arith.addf %198, %199 : vector<64x256xf32>
    %cst_129 = arith.constant 0.000000e+00 : f32
    %201 = vector.broadcast %cst_129 : f32 to vector<64x256xf32>
    %202 = arith.maximumf %200, %201 : vector<64x256xf32>
    %c0_130 = arith.constant 0 : index
    %c0_131 = arith.constant 0 : index
    %203 = vector.load %arg9[%c0_130, %c0_131] : memref<8x64xbf16, #tpu.memory_space<vmem>>, vector<8x64xbf16>
    %204 = arith.truncf %202 : vector<64x256xf32> to vector<64x256xbf16>
    %cst_132 = arith.constant dense<0.000000e+00> : vector<8x256xf32>
    %205 = tpu.matmul %203, %204, %cst_132 {dimension_numbers = #tpu.dot_dimension_numbers<[1], [0], [0], [1], [0, 0, 1, 1], [], []>} : vector<8x64xbf16>, vector<64x256xbf16>, vector<8x256xf32> -> vector<8x256xf32>
    %206 = vector.extract_strided_slice %205 {offsets = [0, 0], sizes = [3, 256], strides = [1, 1]} : vector<8x256xf32> to vector<3x256xf32>
    %207 = vector.broadcast %8 : vector<3x1xf32> to vector<3x256xf32>
    %208 = arith.addf %206, %207 : vector<3x256xf32>
    %c0_133 = arith.constant 0 : index
    %c0_134 = arith.constant 0 : index
    %c0_135 = arith.constant 0 : index
    %209 = vector.load %arg11[%c0_133, %c0_134, %c0_135] : memref<1x3x256xf32, #tpu.memory_space<vmem>>, vector<1x3x256xf32>
    %210 = vector.shape_cast %209 : vector<1x3x256xf32> to vector<3x256xf32>
    %211 = vector.shape_cast %208 : vector<3x256xf32> to vector<1x3x256xf32>
    tpu.vector_store %arg11[%c0_133, %c0_134, %c0_135], %211 {strides = array<i32>} : memref<1x3x256xf32, #tpu.memory_space<vmem>>, vector<1x3x256xf32>,
    return
  }
  func.func @transform_0(%arg0: i32, %arg1: i32) -> (i32, i32, i32) {
    %c0_i32 = arith.constant 0 : i32
    %c0_i32_0 = arith.constant 0 : i32
    return %arg0, %c0_i32, %arg1 : i32, i32, i32
  }
  func.func @transform_1(%arg0: i32, %arg1: i32) -> (i32, i32, i32) {
    %c0_i32 = arith.constant 0 : i32
    %c0_i32_0 = arith.constant 0 : i32
    %c0_i32_1 = arith.constant 0 : i32
    return %arg0, %c0_i32, %c0_i32_0 : i32, i32, i32
  }
  func.func @transform_2(%arg0: i32, %arg1: i32) -> (i32, i32) {
    %c0_i32 = arith.constant 0 : i32
    %c0_i32_0 = arith.constant 0 : i32
    %c0_i32_1 = arith.constant 0 : i32
    return %c0_i32, %c0_i32_0 : i32, i32
  }
  func.func @transform_3(%arg0: i32, %arg1: i32) -> (i32, i32) {
    %c0_i32 = arith.constant 0 : i32
    %c0_i32_0 = arith.constant 0 : i32
    %c0_i32_1 = arith.constant 0 : i32
    return %c0_i32, %c0_i32_0 : i32, i32
  }
  func.func @transform_4(%arg0: i32, %arg1: i32) -> (i32, i32) {
    %c0_i32 = arith.constant 0 : i32
    %c0_i32_0 = arith.constant 0 : i32
    %c0_i32_1 = arith.constant 0 : i32
    return %c0_i32, %c0_i32_0 : i32, i32
  }
  func.func @transform_5(%arg0: i32, %arg1: i32) -> (i32, i32) {
    %c0_i32 = arith.constant 0 : i32
    %c0_i32_0 = arith.constant 0 : i32
    %c0_i32_1 = arith.constant 0 : i32
    return %c0_i32, %c0_i32_0 : i32, i32
  }
  func.func @transform_6(%arg0: i32, %arg1: i32) -> (i32, i32) {
    %c0_i32 = arith.constant 0 : i32
    %c0_i32_0 = arith.constant 0 : i32
    %c0_i32_1 = arith.constant 0 : i32
    return %c0_i32, %c0_i32_0 : i32, i32
  }
  func.func @transform_7(%arg0: i32, %arg1: i32) -> (i32, i32) {
    %c0_i32 = arith.constant 0 : i32
    %c0_i32_0 = arith.constant 0 : i32
    %c0_i32_1 = arith.constant 0 : i32
    return %c0_i32, %c0_i32_0 : i32, i32
  }
  func.func @transform_8(%arg0: i32, %arg1: i32) -> (i32, i32) {
    %c0_i32 = arith.constant 0 : i32
    %c0_i32_0 = arith.constant 0 : i32
    %c0_i32_1 = arith.constant 0 : i32
    return %c0_i32, %c0_i32_0 : i32, i32
  }
  func.func @transform_9(%arg0: i32, %arg1: i32) -> (i32, i32, i32) {
    %c0_i32 = arith.constant 0 : i32
    %c0_i32_0 = arith.constant 0 : i32
    return %arg0, %c0_i32, %arg1 : i32, i32, i32
  }
}

</mosaic_0001>

<bundles_post_ra>
// kernel: tpu_custom_call.1
= control target key start
LH: loop header
LB: loop body
LE: loop exit
PB: predicated region body
PF: predicated region fallthrough
CT: control target
= control target key end

     0   :  { %s2759_s30 = smov 0   ;;  %s2761_s10 = smov 0   ;;  %s3134_s0 = inlined_call_operand.vmem [shape: f32[2,2,256], index: 0, kind: input, shape index: {}]   ;;  %s3135_s1 = inlined_call_operand.vmem [shape: f32[2,64,1], index: 1, kind: input, shape index: {}]   ;;  %s3136_s2 = inlined_call_operand.vmem [shape: f32[64,35], index: 2, kind: input, shape index: {}]   ;;  %s3137_s3 = inlined_call_operand.vmem [shape: f32[64,64], index: 3, kind: input, shape index: {}]   ;;  %s3138_s4 = inlined_call_operand.vmem [shape: f32[8,64], index: 4, kind: input, shape index: {}]   ;;  %s3139_s5 = inlined_call_operand.vmem [shape: bf16[64,35], index: 5, kind: input, shape index: {}]   ;;  %s3140_s6 = inlined_call_operand.vmem [shape: bf16[64,64], index: 6, kind: input, shape index: {}]   ;;  %s3141_s7 = inlined_call_operand.vmem [shape: bf16[8,64], index: 7, kind: input, shape index: {}]   ;;  %s3142_s8 = inlined_call_operand.vmem [shape: f32[64,4], index: 8, kind: input, shape index: {}]   ;;  %s3143_s9 = inlined_call_operand.vmem [shape: f32[2,3,256], index: 9, kind: output, shape index: {}]  }
   0x1   :  { %s2763_s11 = smov 0  }
   0x2 LB: > { %s31_s12 = sadd.s32 1, %s2689_s10  ;;  %p2457_p0 = scmp.ge.s32.totalorder %s2693_s11, 1  ;;  %s2693_s11 = sphi %s2763_s11, %s19_s11   ;;  %s2689_s10 = sphi %s2761_s10, %s3145_s10   ;;  %s2685_s30 = sphi %s2759_s30, %s3144_s30  }
   0x3   : > { %p33_p1 = scmp.ge.s32.totalorder %s31_s12, 2  ;;  %p318_p2 = scmp.lt.s32.totalorder %s2693_s11, 3 }
   0x5   : > { %s3147_s12 = smov (%p33_p1, %s31_s12), 0  ;;  %p319_p3 = pnand %p2457_p0, %p318_p2 }
   0x6   : > { %p368_p4 = scmp.lt.s32.totalorder (!%p319_p3), %s2685_s30, 1  ;;  %v410_v0 = vlaneseq (!%p319_p3)  ;;  %v2695_v1 = vmov (!%p319_p3), 1983009808   ;;  %v2696_v6 = vmov (!%p319_p3), 1.0   ;;  %v2697_v16 = vmov (!%p319_p3), 0.0  }
   0x7   : > { %322 = sbr.rel (%p319_p3) target bundleno = 1731 (0x6c3), region = 56  ;;  %v627_v2 = vunpack.c.l.s4 (!%p319_p3), %v2695_v1  ;;  %1036 = vmatprep.mubr.f32.mxu0 (!%p319_p3), %v2697_v16  ;;  %1238 = vmatprep.mubr.f32.mxu1 (!%p319_p3), %v2697_v16  ;;  %v2698_v23 = vmov (!%p319_p3), 683565275   ;;  %v2699_v25 = vmov (!%p319_p3), 2475754826  }
   0x8   : > { %v630_v3 = vshrl.u32 (!%p319_p3), %v410_v0, 7  ;;  %vm412_vm0 = vcmp.lt.s32.totalorder (!%p319_p3), %v410_v0, 256  ;;  %v2700_v27 = vmov (!%p319_p3), 2131351028   ;;  %v2701_v29 = vmov (!%p319_p3), 2102212464  }
   0x9   : > { %v628_v4 = vunpack.c.0.s8 (!%p319_p3), %v627_v2  ;;  %415 = vst.msk [vmem:[#allocation2 + $0x42] ss:$8 sm:$0x3] (!%p319_p3), %vm412_vm0, %v2696_v6  ;;  %v2702_v31 = vmov (!%p319_p3), 920167782  }
   0xa   : > { %v2703_v38 = vmov (!%p319_p3), 1326507024  }
   0xb   : > { %v2785_v8 = vsub.s32 (!%p319_p3), %v628_v4, %v630_v3 }
   0xe   : > { %s3149_s30 = smov (!%p368_p4, %s2685_s30), 1 }
   0xf   : > { %s2543_s13 = sshll.u32 %s3149_s30, 2  ;;  %s2544_s17 = sshll.u32 %s3149_s30, 6 }
  0x10   : > { %s375_s16 = scalar_lea.vmem %s3134_s0, %s2543_s13  ;;  %s381_s20 = scalar_lea.vmem %s3135_s1, %s2544_s17 }
  0x11   : > { %v393_v5 = vld [vmem:[%s375_s16] sm:$0xf] }
  0x12   : > { %v2783_v7 = vmul.f32 3.1415927, %v393_v5  ;;  %2488 = vst.sshfl [vmem:[#allocation2 + $0x40] sm:$0x3 pattern:$0x76325410] %v393_v5  ;;  %v2789_v10 = vrot.slane %v393_v5, %v2785_v8 }
  0x13   : > { %v2704_v5 = vmov 0  }
  0x14   : > { %v421_v9 = vand.u32 2139095040, %v2783_v7  ;;  %v418_v12 = vand.u32 2147483647, %v2783_v7  ;;  %v2794_v13 = vcombine.high %v2789_v10, %v2789_v10  ;;  %2636 = vset.pattern.permute.xlu0 %v2704_v5  ;;  %2637 = vset.pattern.permute.xlu1 %v2704_v5  ;;  %vm420_vm8 = vcmp.lt.s32.totalorder %v2783_v7, 0 }
  0x15   : > { %vm510_vm0 = vweird.f32 %v2783_v7 }
  0x16   : > { %v422_v11 = vshrl.u32 %v421_v9, 23  ;;  %881 = vst [vmem:[#allocation2 + $0x48] sm:$0x3] %v2794_v13  ;;  %v425_v17 = vand.u32 8388607, %v418_v12  ;;  %v394_v9 = vld [vmem:[%s381_s20] sm:$0xff] }
  0x17   : > { %902 = vperm.xlu0 %2636, %v394_v9   ;;  %vm419_vm9 = vcmp.le.f32.partialorder %v418_v12, 0.7853982 }
  0x18   : > { %v2464_v14 = vadd.s32 4294967169, %v422_v11  ;;  %v426_v20 = vor.u32 8388608, %v425_v17  ;;  %v396_v11 = vld [vmem:[%s381_s20 + $0x10] sm:$0xff]  ;;  %v397_v17 = vld [vmem:[%s381_s20 + $0x18] sm:$0xff] }
  0x19   : > { %912 = vperm.xlu1 %2637, %v396_v11  }
  0x1a   : > { %v428_v15 = vadd.s32 1, %v2464_v14  ;;  %v466_v40 = vshll.u32 %v426_v20, 8  ;;  %v398_v20 = vld [vmem:[%s381_s20 + $0x20] sm:$0xff] }
  0x1c   : > { %vm429_vm1 = vcmp.gt.s32.totalorder %v428_v15, 0 }
  0x1d   : > { %v430_v18 = vsel %vm429_vm1, %v428_v15, 0  ;;  %v395_v15 = vld [vmem:[%s381_s20 + $0x8] sm:$0xff]  ;;  %917 = vperm.xlu1 %2637, %v397_v17   ;;  %vm965_vm1 = vcmask 1042432  }
  0x1e   : > { %v432_v19 = vand.u32 31, %v430_v18  ;;  %v431_v21 = vshrl.u32 %v430_v18, 5  ;;  %907 = vperm.xlu0 %2636, %v395_v15  }
  0x20   : > { %v433_v22 = vsub.s32 32, %v432_v19  ;;  %v435_v24 = vshll.u32 %v2698_v23, %v432_v19  ;;  %v438_v26 = vshll.u32 %v2699_v25, %v432_v19  ;;  %v441_v28 = vshll.u32 %v2700_v27, %v432_v19 }
  0x21   : > { %v444_v30 = vshll.u32 %v2701_v29, %v432_v19  ;;  %v447_v32 = vshll.u32 %v2702_v31, %v432_v19  ;;  %vm450_vm2 = vcmp.lt.s32.totalorder %v431_v21, 1  ;;  %vm453_vm3 = vcmp.lt.s32.totalorder %v431_v21, 4 }
  0x22   : > { %v434_v33 = vshrl.u32 %v2698_v23, %v433_v22  ;;  %v436_v34 = vshrl.u32 %v2699_v25, %v433_v22  ;;  %v439_v35 = vshrl.u32 %v2700_v27, %v433_v22  ;;  %v442_v36 = vshrl.u32 %v2701_v29, %v433_v22  ;;  %922 = vperm.xlu0 %2636, %v398_v20  }
  0x23   : > { %v445_v37 = vshrl.u32 %v2702_v31, %v433_v22  ;;  %v448_v39 = vshrl.u32 %v2703_v38, %v433_v22  ;;  %vm451_vm4 = vcmp.lt.s32.totalorder %v431_v21, 2  ;;  %vm452_vm5 = vcmp.lt.s32.totalorder %v431_v21, 3  ;;  %v399_v21 = vld [vmem:[%s381_s20 + $0x28] sm:$0xff] }
  0x24   : > { %v437_v41 = vor.u32 %v436_v34, %v435_v24  ;;  %v440_v42 = vor.u32 %v439_v35, %v438_v26  ;;  %v443_v43 = vor.u32 %v442_v36, %v441_v28  ;;  %927 = vperm.xlu1 %2637, %v399_v21   ;;  %v400_v26 = vld [vmem:[%s381_s20 + $0x30] sm:$0xff]  ;;  %v401_v28 = vld [vmem:[%s381_s20 + $0x38] sm:$0xff]  ;;  %s2545_s20 = sshll.u32 %s3149_s30, 3 }
  0x25   : > { %v446_v44 = vor.u32 %v445_v37, %v444_v30  ;;  %v449_v45 = vor.u32 %v448_v39, %v447_v32  ;;  %v2831_v37 = vld [vmem:[%s3142_s8] sm:$0xff]  ;;  %v403_v39 = vld [vmem:[%s3142_s8 + $0x8] sm:$0xff]  ;;  %s390_s23 = scalar_lea.vmem %s3143_s9, %s2545_s20 }
  0x26   : > { %v454_v46 = vsel %vm450_vm2, %v434_v33, %v437_v41  ;;  %v455_v47 = vsel %vm453_vm3, %v443_v43, 2102212464  ;;  %v458_v48 = vsel %vm450_vm2, %v437_v41, %v440_v42  ;;  %v462_v49 = vsel %vm450_vm2, %v440_v42, %v443_v43  ;;  %932 = vperm.xlu0 %2636, %v400_v26  }
  0x27   : > { %v456_v50 = vsel %vm452_vm5, %v440_v42, %v455_v47  ;;  %v459_v51 = vsel %vm453_vm3, %v446_v44, 920167782  ;;  %v463_v52 = vsel %vm453_vm3, %v449_v45, 1326507024  ;;  %v405_v45 = vld [vmem:[%s3142_s8 + $0x18] sm:$0xff]  ;;  %vm940_vm2 = vcmask 285696  }
  0x28   : > { %v460_v53 = vsel %vm452_vm5, %v443_v43, %v459_v51  ;;  %v464_v54 = vsel %vm452_vm5, %v446_v44, %v463_v52  ;;  %v457_v55 = vsel %vm451_vm4, %v454_v46, %v456_v50  ;;  %937 = vperm.xlu1 %2637, %v401_v28   ;;  %v404_v44 = vld [vmem:[%s3142_s8 + $0x10] sm:$0xff]  ;;  %v407_v50 = vld [vmem:[%s3142_s8 + $0x28] sm:$0xff]  ;;  %vm1149_vm3 = vcmask 523264  }
  0x29   : > { %v461_v56 = vsel %vm451_vm4, %v458_v48, %v460_v53  ;;  %v465_v57 = vsel %vm451_vm4, %v462_v49, %v464_v54  ;;  %v473_v62 = vmul.u32 %v466_v40, %v457_v55  ;;  %v406_v49 = vld [vmem:[%s3142_s8 + $0x20] sm:$0xff]  ;;  %v408_v54 = vld [vmem:[%s3142_s8 + $0x30] sm:$0xff]  ;;  %v409_v55 = vld [vmem:[%s3142_s8 + $0x38] sm:$0xff] }
  0x2a   : > { %v2812_v58 = vmul.u32.u64.low %v466_v40, %v465_v57  ;;  %v2813_v59 = vmul.u32.u64.high %v466_v40, %v465_v57, %v2812_v58  ;;  %v2815_v60 = vmul.u32.u64.low %v466_v40, %v461_v56  ;;  %v2816_v61 = vmul.u32.u64.high %v466_v40, %v461_v56, %v2815_v60  ;;  %1111 = vperm.xlu0 %2636, %v2831_v37  }
  0x2c   : > { %vm475_vm6 = vc.u32 %v2813_v59, %v2815_v60  ;;  %v476_v63 = vadd.s32 1, %v2816_v61  ;;  %v474_v24 = vadd.s32 %v2815_v60, %v2813_v59  ;;  %1116 = vperm.xlu1 %2637, %v403_v39  }
  0x2e   : > { %v477_v0 = vsel %vm475_vm6, %v476_v63, %v2816_v61  ;;  %1121 = vperm.xlu0 %2636, %v404_v44  }
  0x2f   : > { %v478_v1 = vadd.s32 %v477_v0, %v473_v62 }
  0x30   : > { %1126 = vperm.xlu1 %2637, %v405_v45  }
  0x31   : > { %v479_v2 = vadd.s32 536870912, %v478_v1 }
  0x32   : > { %1131 = vperm.xlu0 %2636, %v406_v49  }
  0x33   : > { %v480_v3 = vshrl.u32 %v479_v2, 30 }
  0x34   : > { %1136 = vperm.xlu1 %2637, %v407_v50  }
  0x35   : > { %v481_v4 = vshll.u32 %v480_v3, 30  ;;  %v504_v47 = vsub.s32 4, %v480_v3 }
  0x36   : > { %1141 = vperm.xlu0 %2636, %v408_v54  }
  0x37   : > { %v482_v6 = vsub.s32 %v478_v1, %v481_v4  ;;  %v505_v52 = vsel %vm420_vm8, %v504_v47, %v480_v3 }
  0x38   : > { %v507_v57 = vsel %vm419_vm9, 0, %v505_v52  ;;  %1146 = vperm.xlu1 %2637, %v409_v55  }
  0x39   : > { %v484_v14 = vsub.s32 0, %v482_v6  ;;  %v511_v12 = vadd.s32 3, %v507_v57  ;;  %v615_v59 = vand.u32 3, %v507_v57 }
  0x3b   : > { %v2465_v18 = vmin.u32 %v484_v14, %v482_v6  ;;  %v512_v58 = vand.u32 3, %v511_v12  ;;  %vm620_vm11 = vcmp.eq.s32.totalorder %v615_v59, 2  ;;  %vm617_vm13 = vcmp.eq.s32.totalorder %v615_v59, 0 }
  0x3c   : > { %vm616_vm15 = vcmp.lt.s32.totalorder %v615_v59, 2 }
  0x3d   : > { %v486_v19 = vclz %v2465_v18  ;;  %vm517_vm10 = vcmp.eq.s32.totalorder %v512_v58, 2  ;;  %vm514_vm12 = vcmp.eq.s32.totalorder %v512_v58, 0  ;;  %vm513_vm14 = vcmp.lt.s32.totalorder %v512_v58, 2 }
  0x3f   : > { %v2466_v22 = vadd.s32 4294967294, %v486_v19 }
  0x41   : > { %vm2467_vm7 = vcmp.lt.s32.totalorder %v2466_v22, 0 }
  0x42   : > { %v489_v30 = vsel %vm2467_vm7, 0, %v2466_v22 }
  0x43   : > { %v490_v32 = vsub.s32 32, %v489_v30  ;;  %v491_v33 = vshll.u32 %v482_v6, %v489_v30  ;;  %v494_v34 = vsub.s32 4294967266, %v489_v30 }
  0x45   : > { %v492_v35 = vshrl.u32 %v474_v24, %v490_v32  ;;  %v495_v36 = vadd.s32 127, %v494_v34 }
  0x47   : > { %v493_v40 = vor.u32 %v492_v35, %v491_v33  ;;  %v496_v41 = vshll.u32 %v495_v36, 23 }
  0x49   : > { %v497_v42 = vor.u32 4788187, %v496_v41  ;;  %v500_v43 = vcvt.s32.f32 %v493_v40 }
  0x4b   : > { %v498_v46 = vand.u32 2147483647, %v497_v42 }
  0x4d   : > { %v501_v48 = vmul.f32 %v500_v43, %v498_v46 }
  0x4f   : > { %v502_v51 = vxor.u32 2147483648, %v501_v48 }
  0x51   : > { %v503_v53 = vsel %vm420_vm8, %v502_v51, %v501_v48 }
  0x52   : > { %v506_v56 = vsel %vm419_vm9, %v2783_v7, %v503_v53 }
  0x53   : > { %2651 = vcosq.f32 %v506_v56 }
  0x54   : > { %2653 = vsinq.f32 %v506_v56 }
  0x5d   : > { %v2652_v60 = vpop.eup %2651 }
  0x5e   : > { %v2654_v61 = vpop.eup %2653  ;;  %v518_v62 = vxor.u32 2147483648, %v2652_v60 }
  0x5f   : > { %v515_v63 = vxor.u32 2147483648, %v2654_v61 }
  0x60   : > { %v519_v0 = vsel %vm517_vm10, %v518_v62, %v2654_v61  ;;  %v622_v1 = vsel %vm620_vm11, %v518_v62, %v2654_v61 }
  0x61   : > { %v516_v2 = vsel %vm514_vm12, %v2652_v60, %v515_v63  ;;  %v619_v3 = vsel %vm617_vm13, %v2652_v60, %v515_v63 }
  0x62   : > { %v520_v4 = vsel %vm513_vm14, %v516_v2, %v519_v0  ;;  %v623_v6 = vsel %vm616_vm15, %v619_v3, %v622_v1 }
  0x63   : > { %v521_v9 = vsel %vm510_vm0, nan, %v520_v4  ;;  %v624_v11 = vsel %vm510_vm0, nan, %v623_v6 }
  0x64   : > { %v632_v14 = vrot.slane %v521_v9, %v2785_v8  ;;  %v651_v15 = vmul.f32 2.0, %v521_v9  ;;  %2472 = vst.sshfl [vmem:[#allocation2] sm:$0x3 pattern:$0x76325410] %v521_v9  ;;  %v645_v17 = vrot.slane %v624_v11, %v2785_v8 }
  0x65   : > { %2473 = vst.sshfl [vmem:[#allocation2 + $0x20] sm:$0x3 pattern:$0x76325410] %v624_v11 }
  0x66   : > { %v633_v18 = vcombine.high %v632_v14, %v632_v14  ;;  %v652_v19 = vmul.f32 %v651_v15, %v624_v11  ;;  %v653_v20 = vmul.f32 %v651_v15, %v521_v9  ;;  %v646_v21 = vcombine.high %v645_v17, %v645_v17 }
  0x68   : > { %637 = vst [vmem:[#allocation2 + $0x8] sm:$0x3] %v633_v18  ;;  %v654_v7 = vsub.f32 1.0, %v653_v20  ;;  %v656_v22 = vcombine.low %v652_v19, %v652_v19  ;;  %v683_v24 = vmul.f32 2.0, %v652_v19  ;;  %650 = vst [vmem:[#allocation2 + $0x28] sm:$0x3] %v646_v21 }
  0x6a   : > { %v663_v26 = vrot.slane %v656_v22, %v2785_v8  ;;  %v684_v28 = vmul.f32 %v683_v24, %v654_v7  ;;  %v685_v30 = vmul.f32 %v683_v24, %v652_v19  ;;  %2474 = vst.sshfl [vmem:[#allocation2] sm:$0x30 pattern:$0x76325410] %v656_v22  ;;  %v670_v32 = vcombine.low %v654_v7, %v654_v7 }
  0x6c   : > { %v664_v33 = vcombine.high %v663_v26, %v663_v26  ;;  %v686_v34 = vsub.f32 1.0, %v685_v30  ;;  %2476 = vst.sshfl [vmem:[#allocation2 + $0x8] sm:$0xc pattern:$0x76325410] %v684_v28  ;;  %v713_v35 = vmul.f32 2.0, %v684_v28  ;;  %v694_v36 = vrot.slane %v684_v28, %v2785_v8 }
  0x6d   : > { %2475 = vst.sshfl [vmem:[#allocation2 + $0x20] sm:$0x30 pattern:$0x76325410] %v670_v32  ;;  %v677_v39 = vrot.slane %v670_v32, %v2785_v8 }
  0x6e   : > { %668 = vst [vmem:[#allocation2 + $0x8] sm:$0xc] %v664_v33  ;;  %v714_v40 = vmul.f32 %v713_v35, %v686_v34  ;;  %v715_v41 = vmul.f32 %v713_v35, %v684_v28  ;;  %2477 = vst.sshfl [vmem:[#allocation2 + $0x28] sm:$0xc pattern:$0x76325410] %v686_v34  ;;  %v695_v42 = vcombine.low %v694_v36, %v694_v36 }
  0x6f   : > { %v707_v43 = vrot.slane %v686_v34, %v2785_v8  ;;  %v678_v44 = vcombine.high %v677_v39, %v677_v39 }
  0x70   : > { %v716_v45 = vsub.f32 1.0, %v715_v41  ;;  %v718_v46 = vcombine.low %v714_v40, %v714_v40  ;;  %v745_v47 = vmul.f32 2.0, %v714_v40  ;;  %698 = vst [vmem:[#allocation2] sm:$0x30] %v695_v42 }
  0x71   : > { %v708_v48 = vcombine.low %v707_v43, %v707_v43  ;;  %682 = vst [vmem:[#allocation2 + $0x28] sm:$0xc] %v678_v44 }
  0x72   : > { %2478 = vst.sshfl [vmem:[#allocation2 + $0x8] sm:$0xc0 pattern:$0x76325410] %v718_v46  ;;  %v746_v49 = vmul.f32 %v745_v47, %v716_v45  ;;  %v747_v50 = vmul.f32 %v745_v47, %v714_v40  ;;  %v725_v51 = vrot.slane %v718_v46, %v2785_v8  ;;  %v732_v52 = vcombine.low %v716_v45, %v716_v45 }
  0x73   : > { %711 = vst [vmem:[#allocation2 + $0x20] sm:$0x30] %v708_v48 }
  0x74   : > { %v748_v53 = vsub.f32 1.0, %v747_v50  ;;  %v756_v54 = vrot.slane %v746_v49, %v2785_v8  ;;  %v775_v55 = vmul.f32 2.0, %v746_v49  ;;  %2480 = vst.sshfl [vmem:[#allocation2 + $0x10] sm:$0x3 pattern:$0x76325410] %v746_v49  ;;  %v726_v56 = vcombine.low %v725_v51, %v725_v51 }
  0x75   : > { %2479 = vst.sshfl [vmem:[#allocation2 + $0x28] sm:$0xc0 pattern:$0x76325410] %v732_v52  ;;  %v739_v57 = vrot.slane %v732_v52, %v2785_v8  ;;  %v882_v50 = vld [vmem:[%s3136_s2] sm:$0xff]  ;;  %v883_v51 = vld [vmem:[%s3136_s2 + $0x8] sm:$0xff] }
  0x76   : > { %v757_v12 = vcombine.high %v756_v54, %v756_v54  ;;  %v776_v58 = vmul.f32 %v775_v55, %v748_v53  ;;  %v777_v59 = vmul.f32 %v775_v55, %v746_v49  ;;  %2481 = vst.sshfl [vmem:[#allocation2 + $0x30] sm:$0x3 pattern:$0x76325410] %v748_v53  ;;  %729 = vst [vmem:[#allocation2] sm:$0xc0] %v726_v56 }
  0x77   : > { %v769_v60 = vrot.slane %v748_v53, %v2785_v8  ;;  %v740_v61 = vcombine.low %v739_v57, %v739_v57  ;;  %v899_v49 = vld [vmem:[#allocation2 + $0x48] sm:$0x7]  ;;  %v884_v52 = vld [vmem:[%s3136_s2 + $0x10] sm:$0xff]  ;;  %v885_v53 = vld [vmem:[%s3136_s2 + $0x18] sm:$0xff] }
  0x78   : > { %761 = vst [vmem:[#allocation2 + $0x18] sm:$0x3] %v757_v12  ;;  %v778_v62 = vsub.f32 1.0, %v777_v59  ;;  %v780_v63 = vcombine.low %v776_v58, %v776_v58  ;;  %v807_v0 = vmul.f32 2.0, %v776_v58  ;;  %v886_v54 = vld [vmem:[%s3136_s2 + $0x20] sm:$0xff]  ;;  %v887_v55 = vld [vmem:[%s3136_s2 + $0x28] sm:$0xff] }
  0x79   : > { %v770_v1 = vcombine.high %v769_v60, %v769_v60  ;;  %743 = vst [vmem:[#allocation2 + $0x20] sm:$0xc0] %v740_v61  ;;  %v891_v35 = vld [vmem:[#allocation2 + $0x8] sm:$0xff]  ;;  %v888_v56 = vld [vmem:[%s3136_s2 + $0x30] sm:$0xff]  ;;  %v889_v57 = vld [vmem:[%s3136_s2 + $0x38] sm:$0xff] }
  0x7a   : > { %v787_v2 = vrot.slane %v780_v63, %v2785_v8  ;;  %v808_v3 = vmul.f32 %v807_v0, %v778_v62  ;;  %v809_v4 = vmul.f32 %v807_v0, %v776_v58  ;;  %2482 = vst.sshfl [vmem:[#allocation2 + $0x10] sm:$0x30 pattern:$0x76325410] %v780_v63  ;;  %v794_v6 = vcombine.low %v778_v62, %v778_v62 }
  0x7b   : > { %774 = vst [vmem:[#allocation2 + $0x38] sm:$0x3] %v770_v1 }
  0x7c   : > { %v788_v9 = vcombine.high %v787_v2, %v787_v2  ;;  %v810_v11 = vsub.f32 1.0, %v809_v4  ;;  %2484 = vst.sshfl [vmem:[#allocation2 + $0x18] sm:$0xc pattern:$0x76325410] %v808_v3  ;;  %v837_v14 = vmul.f32 2.0, %v808_v3  ;;  %v818_v15 = vrot.slane %v808_v3, %v2785_v8 }
  0x7d   : > { %2483 = vst.sshfl [vmem:[#allocation2 + $0x30] sm:$0x30 pattern:$0x76325410] %v794_v6  ;;  %v801_v17 = vrot.slane %v794_v6, %v2785_v8  ;;  %v895_v40 = vld [vmem:[#allocation2 + $0x28] sm:$0xff]  ;;  %v890_v41 = vld [vmem:[#allocation2] sm:$0xff] }
  0x7e   : > { %792 = vst [vmem:[#allocation2 + $0x18] sm:$0xc] %v788_v9  ;;  %v838_v18 = vmul.f32 %v837_v14, %v810_v11  ;;  %v839_v19 = vmul.f32 %v837_v14, %v808_v3  ;;  %2485 = vst.sshfl [vmem:[#allocation2 + $0x38] sm:$0xc pattern:$0x76325410] %v810_v11  ;;  %v819_v20 = vcombine.low %v818_v15, %v818_v15 }
  0x7f   : > { %v831_v21 = vrot.slane %v810_v11, %v2785_v8  ;;  %v802_v7 = vcombine.high %v801_v17, %v801_v17 }
  0x80   : > { %v842_v22 = vcombine.low %v838_v18, %v838_v18  ;;  %822 = vst [vmem:[#allocation2 + $0x10] sm:$0x30] %v819_v20  ;;  %v840_v24 = vsub.f32 1.0, %v839_v19  ;;  %v894_v45 = vld [vmem:[#allocation2 + $0x20] sm:$0xff] }
  0x81   : > { %v832_v26 = vcombine.low %v831_v21, %v831_v21  ;;  %806 = vst [vmem:[#allocation2 + $0x38] sm:$0xc] %v802_v7 }
  0x82   : > { %2486 = vst.sshfl [vmem:[#allocation2 + $0x18] sm:$0xc0 pattern:$0x76325410] %v842_v22  ;;  %v849_v28 = vrot.slane %v842_v22, %v2785_v8  ;;  %v856_v30 = vcombine.low %v840_v24, %v840_v24 }
  0x83   : > { %835 = vst [vmem:[#allocation2 + $0x30] sm:$0x30] %v832_v26 }
  0x84   : > { %v850_v32 = vcombine.low %v849_v28, %v849_v28  ;;  %2487 = vst.sshfl [vmem:[#allocation2 + $0x38] sm:$0xc0 pattern:$0x76325410] %v856_v30  ;;  %v863_v33 = vrot.slane %v856_v30, %v2785_v8  ;;  %v898_v8 = vld [vmem:[#allocation2 + $0x40] sm:$0x7] }
  0x86   : > { %853 = vst [vmem:[#allocation2 + $0x10] sm:$0xc0] %v850_v32  ;;  %v864_v34 = vcombine.low %v863_v33, %v863_v33 }
  0x88   : > { %867 = vst [vmem:[#allocation2 + $0x30] sm:$0xc0] %v864_v34 }
  0x89   : > { %v893_v36 = vld [vmem:[#allocation2 + $0x18] sm:$0xff] }
  0x8a   : > { %v2546_v39 = vpack.c.bf16 %v893_v36, %v891_v35 }
  0x8b   : > { %v897_v42 = vld [vmem:[#allocation2 + $0x38] sm:$0xff] }
  0x8c   : > { %2547 = vmatprep.subr.bf16.mxu0 %v2546_v39  ;;  %v2550_v44 = vpack.c.bf16 %v897_v42, %v895_v40 }
  0x8d   : > { %v892_v43 = vld [vmem:[#allocation2 + $0x10] sm:$0xff] }
  0x8e   : > { %v2548_v46 = vpack.c.bf16 %v892_v43, %v890_v41 }
  0x8f   : > { %v896_v47 = vld [vmem:[#allocation2 + $0x30] sm:$0xff] }
  0x90   : > { %2549 = vmatpush1.bf16.msra.mxu0 %v2548_v46  ;;  %v2552_v48 = vpack.c.bf16 %v896_v47, %v894_v45 }
  0x91   : > { %2551 = vmatprep.subr.bf16.mxu0 %v2550_v44 }
  0x94   : > { %2553 = vmatpush1.bf16.msra.mxu0 %v2552_v48 }
  0x95   : > { %2489 = vmatprep.subr.msk.mxu0 %vm965_vm1, %v899_v49 }
  0x96   : > { %v903_v12 = vpop.permute.xlu0 %902 }
  0x98   : > { %2490 = vmatpush1.msk.msra.mxu0 %vm965_vm1, %v898_v8  ;;  %v913_v2 = vpop.permute.xlu1 %912 }
  0x99   : > { %2491 = vmatmul.mubr.msk.f32.vlgmr.msra.gmra.mrb[0].mxu0 %vm940_vm2, %v882_v50 }
  0x9a   : > { %1042 = vmatprep.mubr.f32.mxu0 %v2697_v16 }
  0x9c   : > { %v918_v20 = vpop.permute.xlu1 %917 }
  0x9d   : > { %2492 = vmatmul.mubr.msk.f32.gmra.mrb[2].mxu0 %vm940_vm2, %v883_v51  ;;  %v908_v61 = vpop.permute.xlu0 %907 }
  0x9e   : > { %1048 = vmatprep.mubr.f32.mxu0 %v2697_v16 }
  0xa1   : > { %2493 = vmatmul.mubr.msk.f32.gmra.mrb[4].mxu0 %vm940_vm2, %v884_v52  ;;  %v923_v39 = vpop.permute.xlu0 %922 }
  0xa2   : > { %1054 = vmatprep.mubr.f32.mxu0 %v2697_v16 }
  0xa3   : > { %v928_v42 = vpop.permute.xlu1 %927 }
  0xa5   : > { %2494 = vmatmul.mubr.msk.f32.gmra.mrb[6].mxu0 %vm940_vm2, %v885_v53 }
  0xa6   : > { %1060 = vmatprep.mubr.f32.mxu0 %v2697_v16 }
  0xa9   : > { %2495 = vmatmul.mubr.msk.f32.gmra.mrb[8].mxu0 %vm940_vm2, %v886_v54  ;;  %v933_v54 = vpop.permute.xlu0 %932 }
  0xaa   : > { %1066 = vmatprep.mubr.f32.mxu0 %v2697_v16 }
  0xad   : > { %2496 = vmatmul.mubr.msk.f32.gmra.mrb[10].mxu0 %vm940_vm2, %v887_v55 }
  0xae   : > { %1072 = vmatprep.mubr.f32.mxu0 %v2697_v16 }
  0xb1   : > { %2497 = vmatmul.mubr.msk.f32.gmra.mrb[12].mxu0 %vm940_vm2, %v888_v56 }
  0xb2   : > { %1078 = vmatprep.mubr.f32.mxu0 %v2697_v16 }
  0xb5   : > { %2498 = vmatmul.mubr.msk.f32.gmra.mrb[14].mxu0 %vm940_vm2, %v889_v57  ;;  %v938_v57 = vpop.permute.xlu1 %937 }
  0xb6   : > { %1371 = vmatprep.mubr.f32.mxu0 %v2697_v16 }
 0x16c   : > { %v1038_v58 = vpop.f32.mrb[0].mxu0 }
 0x16d   : > { %v1040_v59 = vpop.f32.mrb[1].mxu0  ;;  %v1039_v60 = vadd.f32 %v1038_v58, %v903_v12 }
 0x16e   : > { %v1041_v62 = vadd.f32 %v1040_v59, %v903_v12 }
 0x16f   : > { %v1085_v4 = vmax.f32 %v1039_v60, 0.0 }
 0x170   : > { %v1044_v63 = vpop.f32.mrb[2].mxu0  ;;  %v1086_v9 = vmax.f32 %v1041_v62, 0.0 }
 0x171   : > { %v1045_v0 = vadd.f32 %v1044_v63, %v908_v61  ;;  %v1046_v1 = vpop.f32.mrb[3].mxu0 }
 0x172   : > { %v1047_v3 = vadd.f32 %v1046_v1, %v908_v61 }
 0x173   : > { %v1087_v6 = vmax.f32 %v1045_v0, 0.0 }
 0x174   : > { %v1088_v11 = vmax.f32 %v1047_v3, 0.0  ;;  %v1050_v14 = vpop.f32.mrb[4].mxu0 }
 0x175   : > { %v1052_v15 = vpop.f32.mrb[5].mxu0  ;;  %v2556_v17 = vpack.c.bf16 %v1087_v6, %v1085_v4  ;;  %v1051_v19 = vadd.f32 %v1050_v14, %v913_v2  ;;  %v1101_v4 = vld [vmem:[%s3137_s3] sm:$0xff]  ;;  %v1102_v6 = vld [vmem:[%s3137_s3 + $0x8] sm:$0xff] }
 0x176   : > { %v2554_v18 = vpack.c.bf16 %v1088_v11, %v1086_v9  ;;  %v1053_v21 = vadd.f32 %v1052_v15, %v913_v2  ;;  %v1103_v9 = vld [vmem:[%s3137_s3 + $0x10] sm:$0xff]  ;;  %v1104_v11 = vld [vmem:[%s3137_s3 + $0x18] sm:$0xff]  ;;  %v1105_v14 = vld [vmem:[%s3137_s3 + $0x20] sm:$0xff] }
 0x177   : > { %v1089_v28 = vmax.f32 %v1051_v19, 0.0  ;;  %v1106_v15 = vld [vmem:[%s3137_s3 + $0x28] sm:$0xff]  ;;  %v2705_v19 = vmov 2  }
 0x178   : > { %v1056_v7 = vpop.f32.mrb[6].mxu0  ;;  %2555 = vmatprep.subr.bf16.mxu1 %v2554_v18  ;;  %v1090_v32 = vmax.f32 %v1053_v21, 0.0  ;;  %v1108_v18 = vld [vmem:[%s3137_s3 + $0x38] sm:$0xff]  ;;  %2638 = vset.pattern.permute.xlu0 %v2705_v19 }
 0x179   : > { %v1057_v22 = vadd.f32 %v1056_v7, %v918_v20  ;;  %v1058_v24 = vpop.f32.mrb[7].mxu0  ;;  %2557 = vmatpush1.bf16.msra.mxu1 %v2556_v17  ;;  %v1107_v17 = vld [vmem:[%s3137_s3 + $0x30] sm:$0xff]  ;;  %1379 = vperm.xlu0 %2638, %v2831_v37   ;;  %v1112_v7 = vpop.permute.xlu0 %1111 }
 0x17a   : > { %v1059_v26 = vadd.f32 %v1058_v24, %v918_v20  ;;  %v1117_v24 = vpop.permute.xlu1 %1116 }
 0x17b   : > { %v1091_v30 = vmax.f32 %v1057_v22, 0.0 }
 0x17c   : > { %v1092_v33 = vmax.f32 %v1059_v26, 0.0  ;;  %v1062_v34 = vpop.f32.mrb[8].mxu0 }
 0x17d   : > { %v2560_v35 = vpack.c.bf16 %v1091_v30, %v1089_v28  ;;  %v1064_v36 = vpop.f32.mrb[9].mxu0  ;;  %v1063_v41 = vadd.f32 %v1062_v34, %v923_v39 }
 0x17e   : > { %v2558_v40 = vpack.c.bf16 %v1092_v33, %v1090_v32  ;;  %v1065_v43 = vadd.f32 %v1064_v36, %v923_v39 }
 0x17f   : > { %v1093_v48 = vmax.f32 %v1063_v41, 0.0 }
 0x180   : > { %v1068_v44 = vpop.f32.mrb[10].mxu0  ;;  %2559 = vmatprep.subr.bf16.mxu1 %v2558_v40  ;;  %v1094_v8 = vmax.f32 %v1065_v43, 0.0 }
 0x181   : > { %v1069_v45 = vadd.f32 %v1068_v44, %v928_v42  ;;  %v1070_v46 = vpop.f32.mrb[11].mxu0  ;;  %2561 = vmatpush1.bf16.msra.mxu1 %v2560_v35  ;;  %v1127_v44 = vpop.permute.xlu1 %1126 }
 0x182   : > { %v1071_v47 = vadd.f32 %v1070_v46, %v928_v42  ;;  %v1122_v42 = vpop.permute.xlu0 %1121 }
 0x183   : > { %v1095_v49 = vmax.f32 %v1069_v45, 0.0 }
 0x184   : > { %v1096_v50 = vmax.f32 %v1071_v47, 0.0  ;;  %v1074_v51 = vpop.f32.mrb[12].mxu0 }
 0x185   : > { %v2564_v52 = vpack.c.bf16 %v1095_v49, %v1093_v48  ;;  %v1076_v53 = vpop.f32.mrb[13].mxu0  ;;  %v1075_v56 = vadd.f32 %v1074_v51, %v933_v54 }
 0x186   : > { %v2562_v55 = vpack.c.bf16 %v1096_v50, %v1094_v8  ;;  %v1077_v12 = vadd.f32 %v1076_v53, %v933_v54 }
 0x187   : > { %v1097_v62 = vmax.f32 %v1075_v56, 0.0  ;;  %v1132_v56 = vpop.permute.xlu0 %1131 }
 0x188   : > { %v1080_v58 = vpop.f32.mrb[14].mxu0  ;;  %2563 = vmatprep.subr.bf16.mxu1 %v2562_v55  ;;  %v1098_v0 = vmax.f32 %v1077_v12, 0.0 }
 0x189   : > { %v1081_v59 = vadd.f32 %v1080_v58, %v938_v57  ;;  %v1082_v60 = vpop.f32.mrb[15].mxu0  ;;  %2565 = vmatpush1.bf16.msra.mxu1 %v2564_v52  ;;  %v1137_v58 = vpop.permute.xlu1 %1136 }
 0x18a   : > { %v1083_v61 = vadd.f32 %v1082_v60, %v938_v57 }
 0x18b   : > { %v1099_v63 = vmax.f32 %v1081_v59, 0.0 }
 0x18c   : > { %v1100_v1 = vmax.f32 %v1083_v61, 0.0 }
 0x18d   : > { %v2568_v2 = vpack.c.bf16 %v1099_v63, %v1097_v62 }
 0x18e   : > { %v2566_v3 = vpack.c.bf16 %v1100_v1, %v1098_v0 }
 0x190   : > { %2567 = vmatprep.subr.bf16.mxu1 %v2566_v3 }
 0x191   : > { %2569 = vmatpush1.bf16.msra.mxu1 %v2568_v2 }
 0x194   : > { %2499 = vmatmul.mubr.msk.f32.vlgmr.msra.gmra.mrb[0].mxu1 %vm1149_vm3, %v1101_v4 }
 0x195   : > { %1244 = vmatprep.mubr.f32.mxu1 %v2697_v16 }
 0x198   : > { %2500 = vmatmul.mubr.msk.f32.gmra.mrb[2].mxu1 %vm1149_vm3, %v1102_v6 }
 0x199   : > { %1250 = vmatprep.mubr.f32.mxu1 %v2697_v16 }
 0x19c   : > { %2501 = vmatmul.mubr.msk.f32.gmra.mrb[4].mxu1 %vm1149_vm3, %v1103_v9 }
 0x19d   : > { %1256 = vmatprep.mubr.f32.mxu1 %v2697_v16 }
 0x1a0   : > { %2502 = vmatmul.mubr.msk.f32.gmra.mrb[6].mxu1 %vm1149_vm3, %v1104_v11  ;;  %v1142_v11 = vpop.permute.xlu0 %1141 }
 0x1a1   : > { %1262 = vmatprep.mubr.f32.mxu1 %v2697_v16 }
 0x1a4   : > { %2503 = vmatmul.mubr.msk.f32.gmra.mrb[8].mxu1 %vm1149_vm3, %v1105_v14 }
 0x1a5   : > { %1268 = vmatprep.mubr.f32.mxu1 %v2697_v16 }
 0x1a8   : > { %2504 = vmatmul.mubr.msk.f32.gmra.mrb[10].mxu1 %vm1149_vm3, %v1106_v15 }
 0x1a9   : > { %1274 = vmatprep.mubr.f32.mxu1 %v2697_v16 }
 0x1ac   : > { %2505 = vmatmul.mubr.msk.f32.gmra.mrb[12].mxu1 %vm1149_vm3, %v1107_v17  ;;  %v1147_v17 = vpop.permute.xlu1 %1146 }
 0x1ad   : > { %1280 = vmatprep.mubr.f32.mxu1 %v2697_v16 }
 0x1b0   : > { %2506 = vmatmul.mubr.msk.f32.gmra.mrb[14].mxu1 %vm1149_vm3, %v1108_v18 }
 0x1b1   : > { %2064 = vmatprep.mubr.bf16.mxu1 %v2704_v5 }
 0x267   : > { %v1240_v20 = vpop.f32.mrb[0].mxu1 }
 0x268   : > { %v1242_v21 = vpop.f32.mrb[1].mxu1  ;;  %v1241_v22 = vadd.f32 %v1240_v20, %v1112_v7 }
 0x269   : > { %v1243_v26 = vadd.f32 %v1242_v21, %v1112_v7 }
 0x26a   : > { %v1287_v33 = vmax.f32 %v1241_v22, 0.0 }
 0x26b   : > { %v1246_v28 = vpop.f32.mrb[2].mxu1  ;;  %v1288_v35 = vmax.f32 %v1243_v26, 0.0 }
 0x26c   : > { %v1247_v16 = vadd.f32 %v1246_v28, %v1117_v24  ;;  %v1248_v30 = vpop.f32.mrb[3].mxu1 }
 0x26d   : > { %v1249_v32 = vadd.f32 %v1248_v30, %v1117_v24 }
 0x26e   : > { %v1289_v34 = vmax.f32 %v1247_v16, 0.0 }
 0x26f   : > { %v1290_v36 = vmax.f32 %v1249_v32, 0.0  ;;  %v1252_v39 = vpop.f32.mrb[4].mxu1  ;;  %v1303_v32 = vld [vmem:[%s3138_s4] sm:$0xff] }
 0x270   : > { %v2572_v40 = vpack.c.bf16 %v1289_v34, %v1287_v33  ;;  %v1254_v41 = vpop.f32.mrb[5].mxu1  ;;  %v1253_v37 = vadd.f32 %v1252_v39, %v1122_v42  ;;  %v1380_v33 = vpop.permute.xlu0 %1379 }
 0x271   : > { %v2570_v43 = vpack.c.bf16 %v1290_v36, %v1288_v35  ;;  %v1255_v45 = vadd.f32 %v1254_v41, %v1122_v42 }
 0x272   : > { %v1291_v8 = vmax.f32 %v1253_v37, 0.0 }
 0x273   : > { %v1258_v46 = vpop.f32.mrb[6].mxu1  ;;  %2571 = vmatprep.subr.bf16.mxu0 %v2570_v43  ;;  %v1292_v51 = vmax.f32 %v1255_v45, 0.0 }
 0x274   : > { %v1259_v47 = vadd.f32 %v1258_v46, %v1127_v44  ;;  %v1260_v48 = vpop.f32.mrb[7].mxu1  ;;  %2573 = vmatpush1.bf16.msra.mxu0 %v2572_v40 }
 0x275   : > { %v1261_v49 = vadd.f32 %v1260_v48, %v1127_v44 }
 0x276   : > { %v1293_v50 = vmax.f32 %v1259_v47, 0.0 }
 0x277   : > { %v1294_v52 = vmax.f32 %v1261_v49, 0.0  ;;  %v1264_v53 = vpop.f32.mrb[8].mxu1 }
 0x278   : > { %v2576_v54 = vpack.c.bf16 %v1293_v50, %v1291_v8  ;;  %v1266_v55 = vpop.f32.mrb[9].mxu1  ;;  %v1265_v12 = vadd.f32 %v1264_v53, %v1132_v56 }
 0x279   : > { %v2574_v57 = vpack.c.bf16 %v1294_v52, %v1292_v51  ;;  %v1267_v59 = vadd.f32 %v1266_v55, %v1132_v56 }
 0x27a   : > { %v1295_v0 = vmax.f32 %v1265_v12, 0.0 }
 0x27b   : > { %v1270_v60 = vpop.f32.mrb[10].mxu1  ;;  %2575 = vmatprep.subr.bf16.mxu0 %v2574_v57  ;;  %v1296_v2 = vmax.f32 %v1267_v59, 0.0 }
 0x27c   : > { %v1271_v61 = vadd.f32 %v1270_v60, %v1137_v58  ;;  %v1272_v62 = vpop.f32.mrb[11].mxu1  ;;  %2577 = vmatpush1.bf16.msra.mxu0 %v2576_v54 }
 0x27d   : > { %v1273_v63 = vadd.f32 %v1272_v62, %v1137_v58 }
 0x27e   : > { %v1297_v1 = vmax.f32 %v1271_v61, 0.0 }
 0x27f   : > { %v1298_v3 = vmax.f32 %v1273_v63, 0.0  ;;  %v1276_v4 = vpop.f32.mrb[12].mxu1 }
 0x280   : > { %v2580_v6 = vpack.c.bf16 %v1297_v1, %v1295_v0  ;;  %v1278_v9 = vpop.f32.mrb[13].mxu1  ;;  %v1277_v15 = vadd.f32 %v1276_v4, %v1142_v11 }
 0x281   : > { %v2578_v14 = vpack.c.bf16 %v1298_v3, %v1296_v2  ;;  %v1279_v18 = vadd.f32 %v1278_v9, %v1142_v11 }
 0x282   : > { %v1299_v22 = vmax.f32 %v1277_v15, 0.0 }
 0x283   : > { %v1282_v19 = vpop.f32.mrb[14].mxu1  ;;  %2579 = vmatprep.subr.bf16.mxu0 %v2578_v14  ;;  %v1300_v26 = vmax.f32 %v1279_v18, 0.0 }
 0x284   : > { %v1283_v20 = vadd.f32 %v1282_v19, %v1147_v17  ;;  %v1284_v21 = vpop.f32.mrb[15].mxu1  ;;  %2581 = vmatpush1.bf16.msra.mxu0 %v2580_v6 }
 0x285   : > { %v1285_v7 = vadd.f32 %v1284_v21, %v1147_v17 }
 0x286   : > { %v1301_v24 = vmax.f32 %v1283_v20, 0.0 }
 0x287   : > { %v1302_v28 = vmax.f32 %v1285_v7, 0.0 }
 0x288   : > { %v2584_v16 = vpack.c.bf16 %v1301_v24, %v1299_v22 }
 0x289   : > { %v2582_v30 = vpack.c.bf16 %v1302_v28, %v1300_v26 }
 0x28b   : > { %2583 = vmatprep.subr.bf16.mxu0 %v2582_v30 }
 0x28c   : > { %2585 = vmatpush1.bf16.msra.mxu0 %v2584_v16 }
 0x28f   : > { %2507 = vmatmul.mubr.msk.f32.vlgmr.msra.gmra.mrb[16].mxu0 %vm1149_vm3, %v1303_v32 }
 0x290   : > { %2233 = vmatprep.mubr.bf16.mxu0 %v2704_v5 }
 0x362   : > { %v1373_v34 = vpop.f32.mrb[16].mxu0 }
 0x363   : > { %v1382_v35 = vadd.f32 %v1380_v33, %v1373_v34  ;;  %v1375_v36 = vpop.f32.mrb[17].mxu0 }
 0x364   : > { %v1383_v39 = vadd.f32 %v1380_v33, %v1375_v36 }
 0x365   : > { %v1384_v40 = vmul.f32 0.2, %v1382_v35 }
 0x366   : > { %v1385_v41 = vmul.f32 0.2, %v1383_v39 }
 0x367   : > { %v1386_v42 = vadd.f32 %v1384_v40, %v2789_v10 }
 0x368   : > { %v1387_v43 = vadd.f32 %v1385_v41, %v2794_v13 }
 0x369   : > { %v2964_v37 = vmul.f32 3.1415927, %v1386_v42  ;;  %1964 = vst [vmem:[#allocation2 + $0x40] sm:$0x3] %v1386_v42 }
 0x36a   : > { %v2966_v44 = vmul.f32 3.1415927, %v1387_v43  ;;  %1965 = vst [vmem:[#allocation2 + $0x48] sm:$0x3] %v1387_v43 }
 0x36b   : > { %v1390_v45 = vand.u32 2147483647, %v2964_v37  ;;  %v1393_v46 = vand.u32 2139095040, %v2964_v37 }
 0x36c   : > { %v1497_v47 = vand.u32 2139095040, %v2966_v44  ;;  %v1494_v10 = vand.u32 2147483647, %v2966_v44 }
 0x36d   : > { %v1394_v48 = vshrl.u32 %v1393_v46, 23  ;;  %v1397_v49 = vand.u32 8388607, %v1390_v45 }
 0x36e   : > { %v1498_v8 = vshrl.u32 %v1497_v47, 23  ;;  %v1501_v53 = vand.u32 8388607, %v1494_v10 }
 0x36f   : > { %v2508_v13 = vadd.s32 4294967169, %v1394_v48  ;;  %v1398_v52 = vor.u32 8388608, %v1397_v49 }
 0x370   : > { %v2512_v50 = vadd.s32 4294967169, %v1498_v8  ;;  %v1502_v59 = vor.u32 8388608, %v1501_v53 }
 0x371   : > { %v1400_v51 = vadd.s32 1, %v2508_v13  ;;  %v2976_v58 = vshll.u32 %v1398_v52, 8 }
 0x372   : > { %v1504_v54 = vadd.s32 1, %v2512_v50 }
 0x373   : > { %vm1401_vm4 = vcmp.gt.s32.totalorder %v1400_v51, 0 }
 0x374   : > { %v1402_v55 = vsel %vm1401_vm4, %v1400_v51, 0  ;;  %vm1505_vm5 = vcmp.gt.s32.totalorder %v1504_v54, 0  ;;  %vm1392_vm4 = vcmp.lt.s32.totalorder %v2964_v37, 0 }
 0x375   : > { %v1403_v56 = vshrl.u32 %v1402_v55, 5  ;;  %v1404_v57 = vand.u32 31, %v1402_v55  ;;  %v1506_v12 = vsel %vm1505_vm5, %v1504_v54, 0  ;;  %v1542_v54 = vshll.u32 %v1502_v59, 8 }
 0x376   : > { %v2979_v62 = vshrl.u32 %v1506_v12, 5  ;;  %v1508_v63 = vand.u32 31, %v1506_v12  ;;  %vm1391_vm5 = vcmp.le.f32.partialorder %v1390_v45, 0.7853982 }
 0x377   : > { %v1405_v60 = vsub.s32 32, %v1404_v57  ;;  %v1407_v61 = vshll.u32 %v2698_v23, %v1404_v57  ;;  %v1410_v0 = vshll.u32 %v2699_v25, %v1404_v57  ;;  %v1413_v1 = vshll.u32 %v2700_v27, %v1404_v57 }
 0x378   : > { %v1416_v2 = vshll.u32 %v2701_v29, %v1404_v57  ;;  %v1419_v3 = vshll.u32 %v2702_v31, %v1404_v57  ;;  %vm1422_vm6 = vcmp.lt.s32.totalorder %v1403_v56, 1  ;;  %vm1423_vm7 = vcmp.lt.s32.totalorder %v1403_v56, 2 }
 0x379   : > { %v1408_v4 = vshrl.u32 %v2699_v25, %v1405_v60  ;;  %v1411_v6 = vshrl.u32 %v2700_v27, %v1405_v60  ;;  %v1414_v9 = vshrl.u32 %v2701_v29, %v1405_v60  ;;  %v1406_v11 = vshrl.u32 %v2698_v23, %v1405_v60 }
 0x37a   : > { %v1417_v14 = vshrl.u32 %v2702_v31, %v1405_v60  ;;  %v1420_v15 = vshrl.u32 %v2703_v38, %v1405_v60  ;;  %v1509_v20 = vsub.s32 32, %v1508_v63  ;;  %vm1424_vm8 = vcmp.lt.s32.totalorder %v1403_v56, 3 }
 0x37b   : > { %v1409_v17 = vor.u32 %v1408_v4, %v1407_v61  ;;  %v1412_v18 = vor.u32 %v1411_v6, %v1410_v0  ;;  %v1415_v19 = vor.u32 %v1414_v9, %v1413_v1  ;;  %vm1425_vm9 = vcmp.lt.s32.totalorder %v1403_v56, 4 }
 0x37c   : > { %v1418_v21 = vor.u32 %v1417_v14, %v1416_v2  ;;  %v1421_v7 = vor.u32 %v1420_v15, %v1419_v3  ;;  %v1511_v33 = vshll.u32 %v2698_v23, %v1508_v63  ;;  %v1512_v36 = vshrl.u32 %v2699_v25, %v1509_v20 }
 0x37d   : > { %v1426_v22 = vsel %vm1422_vm6, %v1406_v11, %v1409_v17  ;;  %v1427_v24 = vsel %vm1425_vm9, %v1415_v19, 2102212464  ;;  %v1430_v26 = vsel %vm1422_vm6, %v1409_v17, %v1412_v18  ;;  %v1434_v28 = vsel %vm1422_vm6, %v1412_v18, %v1415_v19 }
 0x37e   : > { %v1428_v16 = vsel %vm1424_vm8, %v1412_v18, %v1427_v24  ;;  %v1431_v30 = vsel %vm1425_vm9, %v1418_v21, 920167782  ;;  %v1435_v32 = vsel %vm1425_vm9, %v1421_v7, 1326507024  ;;  %v1514_v39 = vshll.u32 %v2699_v25, %v1508_v63 }
 0x37f   : > { %v1432_v34 = vsel %vm1424_vm8, %v1415_v19, %v1431_v30  ;;  %v1436_v35 = vsel %vm1424_vm8, %v1418_v21, %v1435_v32  ;;  %v1429_v40 = vsel %vm1423_vm7, %v1426_v22, %v1428_v16  ;;  %v1515_v43 = vshrl.u32 %v2700_v27, %v1509_v20 }
 0x380   : > { %v1433_v41 = vsel %vm1423_vm7, %v1430_v26, %v1432_v34  ;;  %v1437_v42 = vsel %vm1423_vm7, %v1434_v28, %v1436_v35  ;;  %v1513_v8 = vor.u32 %v1512_v36, %v1511_v33  ;;  %v1517_v25 = vshll.u32 %v2700_v27, %v1508_v63 }
 0x381   : > { %v3002_v46 = vmul.u32.u64.low %v2976_v58, %v1437_v42  ;;  %v3003_v47 = vmul.u32.u64.high %v2976_v58, %v1437_v42, %v3002_v46  ;;  %v3006_v48 = vmul.u32.u64.low %v2976_v58, %v1433_v41  ;;  %v3007_v49 = vmul.u32.u64.high %v2976_v58, %v1433_v41, %v3006_v48 }
 0x382   : > { %v1516_v13 = vor.u32 %v1515_v43, %v1514_v39  ;;  %v1518_v50 = vshrl.u32 %v2701_v29, %v1509_v20  ;;  %v1520_v51 = vshll.u32 %v2701_v29, %v1508_v63  ;;  %v1521_v52 = vshrl.u32 %v2702_v31, %v1509_v20 }
 0x383   : > { %v1524_v53 = vshrl.u32 %v2703_v38, %v1509_v20  ;;  %v1445_v55 = vmul.u32 %v2976_v58, %v1429_v40  ;;  %v1510_v56 = vshrl.u32 %v2698_v23, %v1509_v20  ;;  %v1523_v12 = vshll.u32 %v2702_v31, %v1508_v63 }
 0x384   : > { %v1519_v57 = vor.u32 %v1518_v50, %v1517_v25  ;;  %vm1447_vm10 = vc.u32 %v3003_v47, %v3006_v48  ;;  %v1448_v27 = vadd.s32 1, %v3007_v49  ;;  %v1522_v60 = vor.u32 %v1521_v52, %v1520_v51 }
 0x385   : > { %vm1526_vm11 = vcmp.lt.s32.totalorder %v2979_v62, 1  ;;  %v1525_v29 = vor.u32 %v1524_v53, %v1523_v12  ;;  %vm1528_vm12 = vcmp.lt.s32.totalorder %v2979_v62, 3  ;;  %vm1529_vm13 = vcmp.lt.s32.totalorder %v2979_v62, 4 }
 0x386   : > { %v1534_v38 = vsel %vm1526_vm11, %v1513_v8, %v1516_v13  ;;  %v1449_v58 = vsel %vm1447_vm10, %v1448_v27, %v3007_v49  ;;  %v1531_v59 = vsel %vm1529_vm13, %v1519_v57, 2102212464  ;;  %v1535_v23 = vsel %vm1529_vm13, %v1522_v60, 920167782 }
 0x387   : > { %v1538_v61 = vsel %vm1526_vm11, %v1516_v13, %v1519_v57  ;;  %v1450_v0 = vadd.s32 %v1449_v58, %v1445_v55  ;;  %vm1527_vm14 = vcmp.lt.s32.totalorder %v2979_v62, 2  ;;  %v1536_v31 = vsel %vm1528_vm12, %v1519_v57, %v1535_v23 }
 0x388   : > { %v1539_v63 = vsel %vm1529_vm13, %v1525_v29, 1326507024  ;;  %v1530_v1 = vsel %vm1526_vm11, %v1510_v56, %v1513_v8  ;;  %v1532_v2 = vsel %vm1528_vm12, %v1516_v13, %v1531_v59  ;;  %v1537_v3 = vsel %vm1527_vm14, %v1534_v38, %v1536_v31 }
 0x389   : > { %v1540_v4 = vsel %vm1528_vm12, %v1522_v60, %v1539_v63  ;;  %v1451_v6 = vadd.s32 536870912, %v1450_v0  ;;  %v3024_v11 = vmul.u32.u64.low %v1542_v54, %v1537_v3  ;;  %v3025_v14 = vmul.u32.u64.high %v1542_v54, %v1537_v3, %v3024_v11 }
 0x38a   : > { %v1541_v9 = vsel %vm1527_vm14, %v1538_v61, %v1540_v4  ;;  %v1533_v19 = vsel %vm1527_vm14, %v1530_v1, %v1532_v2  ;;  %v1446_v40 = vadd.s32 %v3006_v48, %v3003_v47  ;;  %vm1496_vm6 = vcmp.lt.s32.totalorder %v2966_v44, 0 }
 0x38b   : > { %v3027_v15 = vmul.u32.u64.low %v1542_v54, %v1541_v9  ;;  %v3028_v17 = vmul.u32.u64.high %v1542_v54, %v1541_v9, %v3027_v15  ;;  %v1452_v18 = vshrl.u32 %v1451_v6, 30  ;;  %v1552_v21 = vadd.s32 1, %v3025_v14 }
 0x38c   : > { %v1549_v62 = vmul.u32 %v1542_v54, %v1533_v19  ;;  %vm1495_vm7 = vcmp.le.f32.partialorder %v1494_v10, 0.7853982  ;;  %vm1482_vm14 = vweird.f32 %v2964_v37 }
 0x38d   : > { %v1453_v20 = vshll.u32 %v1452_v18, 30  ;;  %vm1551_vm15 = vc.u32 %v3028_v17, %v3024_v11  ;;  %v1550_v56 = vadd.s32 %v3024_v11, %v3028_v17  ;;  %v1476_v48 = vsub.s32 4, %v1452_v18 }
 0x38e   : > { %v1553_v22 = vsel %vm1551_vm15, %v1552_v21, %v3025_v14 }
 0x38f   : > { %v1454_v7 = vsub.s32 %v1450_v0, %v1453_v20  ;;  %v1554_v24 = vadd.s32 %v1553_v22, %v1549_v62  ;;  %v1477_v61 = vsel %vm1392_vm4, %v1476_v48, %v1452_v18 }
 0x390   : > { %v1479_v63 = vsel %vm1391_vm5, 0, %v1477_v61 }
 0x391   : > { %v1456_v26 = vsub.s32 0, %v1454_v7  ;;  %v1555_v28 = vadd.s32 536870912, %v1554_v24  ;;  %v1483_v6 = vadd.s32 3, %v1479_v63  ;;  %v1691_v15 = vand.u32 3, %v1479_v63 }
 0x393   : > { %v2509_v16 = vmin.u32 %v1456_v26, %v1454_v7  ;;  %v1556_v30 = vshrl.u32 %v1555_v28, 30  ;;  %v1484_v14 = vand.u32 3, %v1483_v6  ;;  %vm1696_vm9 = vcmp.eq.s32.totalorder %v1691_v15, 2 }
 0x394   : > { %vm1693_vm11 = vcmp.eq.s32.totalorder %v1691_v15, 0  ;;  %vm1692_vm13 = vcmp.lt.s32.totalorder %v1691_v15, 2 }
 0x395   : > { %v1458_v32 = vclz %v2509_v16  ;;  %v1557_v33 = vshll.u32 %v1556_v30, 30  ;;  %v1580_v3 = vsub.s32 4, %v1556_v30  ;;  %vm1489_vm8 = vcmp.eq.s32.totalorder %v1484_v14, 2 }
 0x396   : > { %vm1486_vm10 = vcmp.eq.s32.totalorder %v1484_v14, 0  ;;  %vm1485_vm12 = vcmp.lt.s32.totalorder %v1484_v14, 2 }
 0x397   : > { %v2510_v34 = vadd.s32 4294967294, %v1458_v32  ;;  %v1558_v35 = vsub.s32 %v1554_v24, %v1557_v33  ;;  %v1581_v11 = vsel %vm1496_vm6, %v1580_v3, %v1556_v30 }
 0x398   : > { %v1583_v18 = vsel %vm1495_vm7, 0, %v1581_v11 }
 0x399   : > { %vm2511_vm0 = vcmp.lt.s32.totalorder %v2510_v34, 0  ;;  %v1560_v39 = vsub.s32 0, %v1558_v35 }
 0x39a   : > { %v1461_v36 = vsel %vm2511_vm0, 0, %v2510_v34  ;;  %v1794_v34 = vand.u32 3, %v1583_v18 }
 0x39b   : > { %v1462_v41 = vsub.s32 32, %v1461_v36  ;;  %v1466_v42 = vsub.s32 4294967266, %v1461_v36  ;;  %v2513_v43 = vmin.u32 %v1560_v39, %v1558_v35  ;;  %v1463_v46 = vshll.u32 %v1454_v7, %v1461_v36 }
 0x39c   : > { %v1587_v7 = vadd.s32 3, %v1583_v18  ;;  %vm1796_vm0 = vcmp.eq.s32.totalorder %v1794_v34, 0 }
 0x39d   : > { %v1464_v49 = vshrl.u32 %v1446_v40, %v1462_v41  ;;  %v1467_v8 = vadd.s32 127, %v1466_v42  ;;  %v1562_v13 = vclz %v2513_v43 }
 0x39e   : > { %v1588_v33 = vand.u32 3, %v1587_v7 }
 0x39f   : > { %v1465_v25 = vor.u32 %v1464_v49, %v1463_v46  ;;  %v1468_v50 = vshll.u32 %v1467_v8, 23  ;;  %v2514_v51 = vadd.s32 4294967294, %v1562_v13 }
 0x3a0   : > { %vm1593_vm15 = vcmp.eq.s32.totalorder %v1588_v33, 2 }
 0x3a1   : > { %v1469_v52 = vor.u32 4788187, %v1468_v50  ;;  %vm2515_vm1 = vcmp.lt.s32.totalorder %v2514_v51, 0  ;;  %v1472_v54 = vcvt.s32.f32 %v1465_v25 }
 0x3a2   : > { %v1565_v55 = vsel %vm2515_vm1, 0, %v2514_v51  ;;  %vm1799_vm1 = vcmp.eq.s32.totalorder %v1794_v34, 2 }
 0x3a3   : > { %v1470_v53 = vand.u32 2147483647, %v1469_v52  ;;  %v1566_v57 = vsub.s32 32, %v1565_v55  ;;  %v1570_v12 = vsub.s32 4294967266, %v1565_v55  ;;  %v1567_v27 = vshll.u32 %v1558_v35, %v1565_v55 }
 0x3a5   : > { %v1473_v47 = vmul.f32 %v1472_v54, %v1470_v53  ;;  %v1568_v60 = vshrl.u32 %v1550_v56, %v1566_v57  ;;  %v1571_v29 = vadd.s32 127, %v1570_v12 }
 0x3a7   : > { %v1474_v38 = vxor.u32 2147483648, %v1473_v47  ;;  %v1569_v58 = vor.u32 %v1568_v60, %v1567_v27  ;;  %v1572_v59 = vshll.u32 %v1571_v29, 23 }
 0x3a9   : > { %v1475_v23 = vsel %vm1392_vm4, %v1474_v38, %v1473_v47  ;;  %v1573_v31 = vor.u32 4788187, %v1572_v59  ;;  %v1576_v2 = vcvt.s32.f32 %v1569_v58  ;;  %vm1589_vm4 = vcmp.lt.s32.totalorder %v1588_v33, 2 }
 0x3aa   : > { %v1478_v0 = vsel %vm1391_vm5, %v2964_v37, %v1475_v23  ;;  %vm1590_vm5 = vcmp.eq.s32.totalorder %v1588_v33, 0 }
 0x3ab   : > { %2655 = vcosq.f32 %v1478_v0  ;;  %v1574_v1 = vand.u32 2147483647, %v1573_v31 }
 0x3ac   : > { %2657 = vsinq.f32 %v1478_v0 }
 0x3ad   : > { %v1577_v4 = vmul.f32 %v1576_v2, %v1574_v1 }
 0x3af   : > { %v1578_v9 = vxor.u32 2147483648, %v1577_v4 }
 0x3b1   : > { %v1579_v45 = vsel %vm1496_vm6, %v1578_v9, %v1577_v4  ;;  %vm1586_vm6 = vweird.f32 %v2966_v44 }
 0x3b2   : > { %v1582_v17 = vsel %vm1495_vm7, %v2966_v44, %v1579_v45  ;;  %vm1795_vm7 = vcmp.lt.s32.totalorder %v1794_v34, 2 }
 0x3b3   : > { %2659 = vcosq.f32 %v1582_v17 }
 0x3b4   : > { %2661 = vsinq.f32 %v1582_v17 }
 0x3b5   : > { %v2656_v19 = vpop.eup %2655 }
 0x3b6   : > { %v2658_v20 = vpop.eup %2657  ;;  %v1490_v21 = vxor.u32 2147483648, %v2656_v19 }
 0x3b7   : > { %v1487_v62 = vxor.u32 2147483648, %v2658_v20 }
 0x3b8   : > { %v1491_v22 = vsel %vm1489_vm8, %v1490_v21, %v2658_v20  ;;  %v1698_v24 = vsel %vm1696_vm9, %v1490_v21, %v2658_v20  ;;  %vm2022_vm8 = vcmask 1040384   ;;  %vm2023_vm9 = vcmask 1041408  }
 0x3b9   : > { %v1488_v10 = vsel %vm1486_vm10, %v2656_v19, %v1487_v62  ;;  %v1695_v26 = vsel %vm1693_vm11, %v2656_v19, %v1487_v62 }
 0x3ba   : > { %v1492_v28 = vsel %vm1485_vm12, %v1488_v10, %v1491_v22  ;;  %v1699_v16 = vsel %vm1692_vm13, %v1695_v26, %v1698_v24 }
 0x3bb   : > { %v1493_v30 = vsel %vm1482_vm14, nan, %v1492_v28  ;;  %v1700_v32 = vsel %vm1482_vm14, nan, %v1699_v16 }
 0x3bc   : > { %1804 = vst [vmem:[#allocation2] sm:$0x3] %v1493_v30  ;;  %1806 = vst [vmem:[#allocation2 + $0x20] sm:$0x3] %v1700_v32  ;;  %v1808_v35 = vmul.f32 2.0, %v1493_v30 }
 0x3bd   : > { %v2660_v36 = vpop.eup %2659 }
 0x3be   : > { %v1810_v39 = vmul.f32 %v1808_v35, %v1700_v32  ;;  %v1812_v40 = vmul.f32 %v1808_v35, %v1493_v30  ;;  %v2662_v41 = vpop.eup %2661  ;;  %v1594_v42 = vxor.u32 2147483648, %v2660_v36 }
 0x3bf   : > { %v1591_v49 = vxor.u32 2147483648, %v2662_v41 }
 0x3c0   : > { %v1814_v43 = vsub.f32 1.0, %v1812_v40  ;;  %v1818_v46 = vrot.slane %v1810_v39, 6  ;;  %v1832_v37 = vmul.f32 2.0, %v1810_v39  ;;  %v1595_v8 = vsel %vm1593_vm15, %v1594_v42, %v2662_v41 }
 0x3c1   : > { %v1801_v13 = vsel %vm1799_vm1, %v1594_v42, %v2662_v41  ;;  %v1592_v52 = vsel %vm1590_vm5, %v2660_v36, %v1591_v49  ;;  %v1798_v54 = vsel %vm1796_vm0, %v2660_v36, %v1591_v49 }
 0x3c2   : > { %1822 = vst [vmem:[#allocation2] sm:$0xc] %v1818_v46  ;;  %v1826_v25 = vrot.slane %v1814_v43, 6  ;;  %v1834_v50 = vmul.f32 %v1832_v37, %v1814_v43  ;;  %v1836_v51 = vmul.f32 %v1832_v37, %v1810_v39  ;;  %v1596_v53 = vsel %vm1589_vm4, %v1592_v52, %v1595_v8 }
 0x3c3   : > { %v1597_v12 = vsel %vm1586_vm6, nan, %v1596_v53  ;;  %v1802_v47 = vsel %vm1795_vm7, %v1798_v54, %v1801_v13 }
 0x3c4   : > { %1830 = vst [vmem:[#allocation2 + $0x20] sm:$0xc] %v1826_v25  ;;  %v1838_v55 = vsub.f32 1.0, %v1836_v51  ;;  %v1842_v56 = vrot.slane %v1834_v50, 4  ;;  %v1856_v57 = vmul.f32 2.0, %v1834_v50  ;;  %v1809_v48 = vmul.f32 2.0, %v1597_v12 }
 0x3c5   : > { %1805 = vst [vmem:[#allocation2 + $0x8] sm:$0x3] %v1597_v12  ;;  %v1803_v38 = vsel %vm1586_vm6, nan, %v1802_v47 }
 0x3c6   : > { %1846 = vst [vmem:[#allocation2] sm:$0x30] %v1842_v56  ;;  %v1850_v27 = vrot.slane %v1838_v55, 4  ;;  %v1858_v60 = vmul.f32 %v1856_v57, %v1838_v55  ;;  %v1860_v29 = vmul.f32 %v1856_v57, %v1834_v50  ;;  %1807 = vst [vmem:[#allocation2 + $0x28] sm:$0x3] %v1803_v38  ;;  %v1811_v58 = vmul.f32 %v1809_v48, %v1803_v38 }
 0x3c7   : > { %v1813_v59 = vmul.f32 %v1809_v48, %v1597_v12 }
 0x3c8   : > { %1854 = vst [vmem:[#allocation2 + $0x20] sm:$0x30] %v1850_v27  ;;  %v1862_v23 = vsub.f32 1.0, %v1860_v29  ;;  %v1866_v61 = vrot.slane %v1858_v60, 2  ;;  %v1880_v0 = vmul.f32 2.0, %v1858_v60  ;;  %v1819_v63 = vrot.slane %v1811_v58, 6 }
 0x3c9   : > { %v1815_v31 = vsub.f32 1.0, %v1813_v59  ;;  %v1833_v1 = vmul.f32 2.0, %v1811_v58 }
 0x3ca   : > { %1870 = vst [vmem:[#allocation2] sm:$0xc0] %v1866_v61  ;;  %v1874_v2 = vrot.slane %v1862_v23, 2  ;;  %v1882_v3 = vmul.f32 %v1880_v0, %v1862_v23  ;;  %v1884_v4 = vmul.f32 %v1880_v0, %v1858_v60  ;;  %1823 = vst [vmem:[#allocation2 + $0x8] sm:$0xc] %v1819_v63 }
 0x3cb   : > { %v1827_v6 = vrot.slane %v1815_v31, 6  ;;  %v1835_v9 = vmul.f32 %v1833_v1, %v1815_v31  ;;  %v1837_v11 = vmul.f32 %v1833_v1, %v1811_v58  ;;  %v1983_v0 = vld [vmem:[#allocation2 + $0x48] sm:$0x7]  ;;  %v2706_v1 = vmov 65535  }
 0x3cc   : > { %1878 = vst [vmem:[#allocation2 + $0x20] sm:$0xc0] %v1874_v2  ;;  %v1886_v44 = vsub.f32 1.0, %v1884_v4  ;;  %1888 = vst [vmem:[#allocation2 + $0x10] sm:$0x3] %v1882_v3  ;;  %v1892_v45 = vmul.f32 2.0, %v1882_v3 }
 0x3cd   : > { %1831 = vst [vmem:[#allocation2 + $0x28] sm:$0xc] %v1827_v6  ;;  %v1839_v14 = vsub.f32 1.0, %v1837_v11  ;;  %v1843_v15 = vrot.slane %v1835_v9, 4  ;;  %v1857_v17 = vmul.f32 2.0, %v1835_v9  ;;  %v2024_v2 = vsel %vm2022_vm8, 4294967295, %v2706_v1 }
 0x3ce   : > { %1890 = vst [vmem:[#allocation2 + $0x30] sm:$0x3] %v1886_v44  ;;  %v1894_v18 = vmul.f32 %v1892_v45, %v1886_v44  ;;  %v1896_v19 = vmul.f32 %v1892_v45, %v1882_v3  ;;  %v1982_v44 = vld [vmem:[#allocation2 + $0x40] sm:$0x7]  ;;  %v1989_v45 = vpack.c.bf16 %v1983_v0, %v1983_v0 }
 0x3cf   : > { %1847 = vst [vmem:[#allocation2 + $0x8] sm:$0x30] %v1843_v15  ;;  %v1851_v20 = vrot.slane %v1839_v14, 4  ;;  %v1859_v21 = vmul.f32 %v1857_v17, %v1839_v14  ;;  %v1861_v62 = vmul.f32 %v1857_v17, %v1835_v9  ;;  %v2025_v14 = vsel %vm2023_vm9, %v2024_v2, 0 }
 0x3d0   : > { %v1898_v7 = vsub.f32 1.0, %v1896_v19  ;;  %v1902_v22 = vrot.slane %v1894_v18, 6  ;;  %v1916_v24 = vmul.f32 2.0, %v1894_v18  ;;  %v2030_v19 = vand.u32 %v2025_v14, %v1989_v45  ;;  %v2650_v45 = vld [vmem:[%s3140_s6 + $0x18] sm:$0xff]  }
 0x3d1   : > { %1855 = vst [vmem:[#allocation2 + $0x28] sm:$0x30] %v1851_v20  ;;  %v1863_v10 = vsub.f32 1.0, %v1861_v62  ;;  %v1867_v26 = vrot.slane %v1859_v21, 2  ;;  %v1881_v28 = vmul.f32 2.0, %v1859_v21  ;;  %v1974_v63 = vld [vmem:[#allocation2] sm:$0xff] }
 0x3d2   : > { %v1910_v16 = vrot.slane %v1898_v7, 6  ;;  %v1918_v30 = vmul.f32 %v1916_v24, %v1898_v7  ;;  %v1920_v32 = vmul.f32 %v1916_v24, %v1894_v18  ;;  %1906 = vst [vmem:[#allocation2 + $0x10] sm:$0xc] %v1902_v22  ;;  %v1988_v18 = vpack.c.bf16 %v1982_v44, %v1982_v44  ;;  %v2644_v62 = vld [vmem:[%s3139_s5 + $0x8] sm:$0xff]   ;;  %v2645_v7 = vld [vmem:[%s3139_s5 + $0x10] sm:$0xff]   ;;  %v2646_v22 = vld [vmem:[%s3139_s5 + $0x18] sm:$0xff]  }
 0x3d3   : > { %1871 = vst [vmem:[#allocation2 + $0x8] sm:$0xc0] %v1867_v26  ;;  %v1875_v33 = vrot.slane %v1863_v10, 2  ;;  %v1883_v34 = vmul.f32 %v1881_v28, %v1863_v10  ;;  %v1885_v35 = vmul.f32 %v1881_v28, %v1859_v21  ;;  %v1978_v15 = vld [vmem:[#allocation2 + $0x20] sm:$0xff]  ;;  %v2707_v24 = vmov 1   ;;  %v2664_v26 = vld [vmem:[%s3142_s8 + $0x10] sm:$0xff] }
 0x3d4   : > { %v1922_v36 = vsub.f32 1.0, %v1920_v32  ;;  %v1926_v39 = vrot.slane %v1918_v30, 4  ;;  %v1940_v40 = vmul.f32 2.0, %v1918_v30  ;;  %1914 = vst [vmem:[#allocation2 + $0x30] sm:$0xc] %v1910_v16  ;;  %v2027_v20 = vand.u32 %v2025_v14, %v1988_v18  ;;  %v2643_v21 = vld [vmem:[%s3139_s5] sm:$0xff]   ;;  %2639 = vset.pattern.permute.xlu1 %v2707_v24  ;;  %2640 = vset.pattern.permute.xlu0 %v2707_v24 }
 0x3d5   : > { %1879 = vst [vmem:[#allocation2 + $0x28] sm:$0xc0] %v1875_v33  ;;  %v1887_v41 = vsub.f32 1.0, %v1885_v35  ;;  %1889 = vst [vmem:[#allocation2 + $0x18] sm:$0x3] %v1883_v34  ;;  %v1893_v42 = vmul.f32 2.0, %v1883_v34  ;;  %2146 = vperm.xlu0 %2640, %v2664_v26  }
 0x3d6   : > { %v1934_v43 = vrot.slane %v1922_v36, 4  ;;  %v1942_v46 = vmul.f32 %v1940_v40, %v1922_v36  ;;  %v1944_v37 = vmul.f32 %v1940_v40, %v1918_v30  ;;  %1930 = vst [vmem:[#allocation2 + $0x10] sm:$0x30] %v1926_v39  ;;  %v3073_v10 = vld [vmem:[%s3142_s8] sm:$0xff]  ;;  %v2665_v28 = vld [vmem:[%s3142_s8 + $0x8] sm:$0xff]  ;;  %v2667_v30 = vld [vmem:[%s3142_s8 + $0x18] sm:$0xff] }
 0x3d7   : > { %1891 = vst [vmem:[#allocation2 + $0x38] sm:$0x3] %v1887_v41  ;;  %v1895_v49 = vmul.f32 %v1893_v42, %v1887_v41  ;;  %v1897_v8 = vmul.f32 %v1893_v42, %v1883_v34  ;;  %2138 = vperm.xlu1 %2639, %v3073_v10   ;;  %v2666_v16 = vld [vmem:[%s3142_s8 + $0x28] sm:$0xff]  ;;  %v2668_v32 = vld [vmem:[%s3142_s8 + $0x38] sm:$0xff]  ;;  %v2669_v33 = vld [vmem:[%s3142_s8 + $0x20] sm:$0xff]  ;;  %v2708_v14 = vmov 3  }
 0x3d8   : > { %v1946_v13 = vsub.f32 1.0, %v1944_v37  ;;  %v1950_v25 = vrot.slane %v1942_v46, 2  ;;  %1938 = vst [vmem:[#allocation2 + $0x30] sm:$0x30] %v1934_v43  ;;  %v2670_v34 = vld [vmem:[%s3142_s8 + $0x30] sm:$0xff] }
 0x3d9   : > { %v1899_v50 = vsub.f32 1.0, %v1897_v8  ;;  %v1903_v51 = vrot.slane %v1895_v49, 6  ;;  %v1917_v52 = vmul.f32 2.0, %v1895_v49  ;;  %2158 = vperm.xlu0 %2640, %v2666_v16   ;;  %v2649_v44 = vld [vmem:[%s3140_s6 + $0x10] sm:$0xff]  }
 0x3da   : > { %v1958_v53 = vrot.slane %v1946_v13, 2  ;;  %1954 = vst [vmem:[#allocation2 + $0x10] sm:$0xc0] %v1950_v25  ;;  %v1975_v23 = vld [vmem:[#allocation2 + $0x8] sm:$0xff] }
 0x3db   : > { %v1911_v54 = vrot.slane %v1899_v50, 6  ;;  %v1919_v55 = vmul.f32 %v1917_v52, %v1899_v50  ;;  %v1921_v56 = vmul.f32 %v1917_v52, %v1895_v49  ;;  %1907 = vst [vmem:[#allocation2 + $0x18] sm:$0xc] %v1903_v51  ;;  %2142 = vperm.xlu1 %2639, %v2665_v28  }
 0x3dc   : > { %1962 = vst [vmem:[#allocation2 + $0x30] sm:$0xc0] %v1958_v53  ;;  %v1979_v4 = vld [vmem:[#allocation2 + $0x28] sm:$0xff] }
 0x3dd   : > { %v1923_v57 = vsub.f32 1.0, %v1921_v56  ;;  %v1941_v12 = vmul.f32 2.0, %v1919_v55  ;;  %1915 = vst [vmem:[#allocation2 + $0x38] sm:$0xc] %v1911_v54  ;;  %v1927_v47 = vrot.slane %v1919_v55, 4  ;;  %2166 = vperm.xlu0 %2640, %v2668_v32  }
 0x3df   : > { %v1935_v48 = vrot.slane %v1923_v57, 4  ;;  %v1943_v27 = vmul.f32 %v1941_v12, %v1923_v57  ;;  %v1945_v60 = vmul.f32 %v1941_v12, %v1919_v55  ;;  %1931 = vst [vmem:[#allocation2 + $0x18] sm:$0x30] %v1927_v47  ;;  %2150 = vperm.xlu1 %2639, %v2667_v30  }
 0x3e1   : > { %v1951_v29 = vrot.slane %v1943_v27, 2  ;;  %1939 = vst [vmem:[#allocation2 + $0x38] sm:$0x30] %v1935_v48  ;;  %v1947_v38 = vsub.f32 1.0, %v1945_v60  ;;  %v1976_v59 = vld [vmem:[#allocation2 + $0x10] sm:$0xff]  ;;  %2642 = vset.pattern.permute.xlu0 %v2708_v14 }
 0x3e2   : > { %v1984_v3 = vpack.c.bf16 %v1976_v59, %v1974_v63 }
 0x3e3   : > { %1955 = vst [vmem:[#allocation2 + $0x18] sm:$0xc0] %v1951_v29  ;;  %v1959_v58 = vrot.slane %v1947_v38, 2  ;;  %v1980_v11 = vld [vmem:[#allocation2 + $0x30] sm:$0xff]  ;;  %2154 = vperm.xlu1 %2639, %v2669_v33  }
 0x3e4   : > { %v1986_v17 = vpack.c.bf16 %v1980_v11, %v1978_v15  ;;  %v2648_v11 = vld [vmem:[%s3140_s6 + $0x8] sm:$0xff]  }
 0x3e5   : > { %1963 = vst [vmem:[#allocation2 + $0x38] sm:$0xc0] %v1959_v58 }
 0x3e7   : > { %2162 = vperm.xlu1 %2639, %v2670_v34  }
 0x3ea   : > { %v1977_v61 = vld [vmem:[#allocation2 + $0x18] sm:$0xff] }
 0x3eb   : > { %v1985_v31 = vpack.c.bf16 %v1977_v61, %v1975_v23  ;;  %2641 = vset.pattern.permute.xlu1 %v2708_v14 }
 0x3ec   : > { %v1981_v6 = vld [vmem:[#allocation2 + $0x38] sm:$0xff]  ;;  %2344 = vperm.xlu1 %2641, %v3073_v10  }
 0x3ed   : > { %2032 = vmatprep.subr.bf16.mxu1 %v1985_v31  ;;  %v1987_v9 = vpack.c.bf16 %v1981_v6, %v1979_v4 }
 0x3ee   : > { %2033 = vmatpush1.bf16.msra.mxu1 %v1984_v3 }
 0x3ef   : > { %2034 = vmatprep.subr.bf16.mxu1 %v1987_v9  ;;  %v2647_v9 = vld [vmem:[%s3140_s6] sm:$0xff]  }
 0x3f2   : > { %2035 = vmatpush1.bf16.msra.mxu1 %v1986_v17 }
 0x3f3   : > { %2036 = vmatprep.subr.bf16.mxu1 %v2030_v19 }
 0x3f6   : > { %2037 = vmatpush1.bf16.msra.mxu1 %v2027_v20 }
 0x3f9   : > { %2528 = vmatmul.mubr.msk.bf16.vlgmr.msra.gmra.mrb[16].mxu1 %vm940_vm2, %v2643_v21 }
 0x3fa   : > { %2074 = vmatprep.mubr.bf16.mxu1 %v2704_v5 }
 0x401   : > { %2529 = vmatmul.mubr.msk.bf16.gmra.mrb[20].mxu1 %vm940_vm2, %v2644_v62 }
 0x402   : > { %2084 = vmatprep.mubr.bf16.mxu1 %v2704_v5 }
 0x409   : > { %2530 = vmatmul.mubr.msk.bf16.gmra.mrb[24].mxu1 %vm940_vm2, %v2645_v7 }
 0x40a   : > { %2094 = vmatprep.mubr.bf16.mxu1 %v2704_v5 }
 0x411   : > { %2531 = vmatmul.mubr.msk.bf16.gmra.mrb[28].mxu1 %vm940_vm2, %v2646_v22 }
 0x412   : > { %2334 = vmatprep.mubr.bf16.mxu1 %v2704_v5 }
 0x454   : > { %v2147_v30 = vpop.permute.xlu0 %2146 }
 0x456   : > { %v2139_v15 = vpop.permute.xlu1 %2138 }
 0x45a   : > { %v2143_v20 = vpop.permute.xlu1 %2142 }
 0x4cc   : > { %v2066_v35 = vpop.f32.mrb[16].mxu1 }
 0x4cd   : > { %v2068_v36 = vpop.f32.mrb[17].mxu1  ;;  %v2105_v40 = vmax.f32 %v2066_v35, 0.0 }
 0x4ce   : > { %v2070_v39 = vpop.f32.mrb[18].mxu1  ;;  %v2106_v43 = vmax.f32 %v2068_v36, 0.0  ;;  %v2151_v36 = vpop.permute.xlu1 %2150 }
 0x4cf   : > { %v2107_v41 = vmax.f32 %v2070_v39, 0.0  ;;  %v2072_v42 = vpop.f32.mrb[19].mxu1 }
 0x4d0   : > { %v2108_v46 = vmax.f32 %v2072_v42, 0.0 }
 0x4d1   : > { %v2129_v37 = vpack.c.bf16 %v2107_v41, %v2105_v40 }
 0x4d2   : > { %v2130_v49 = vpack.c.bf16 %v2108_v46, %v2106_v43 }
 0x4d4   : > { %v2076_v8 = vpop.f32.mrb[20].mxu1  ;;  %2201 = vmatprep.subr.bf16.mxu0 %v2130_v49 }
 0x4d5   : > { %v2078_v13 = vpop.f32.mrb[21].mxu1  ;;  %2202 = vmatpush1.bf16.msra.mxu0 %v2129_v37  ;;  %v2109_v50 = vmax.f32 %v2076_v8, 0.0 }
 0x4d6   : > { %v2080_v25 = vpop.f32.mrb[22].mxu1  ;;  %v2110_v53 = vmax.f32 %v2078_v13, 0.0 }
 0x4d7   : > { %v2111_v51 = vmax.f32 %v2080_v25, 0.0  ;;  %v2082_v52 = vpop.f32.mrb[23].mxu1  ;;  %v2155_v25 = vpop.permute.xlu1 %2154 }
 0x4d8   : > { %v2112_v54 = vmax.f32 %v2082_v52, 0.0 }
 0x4d9   : > { %v2131_v55 = vpack.c.bf16 %v2111_v51, %v2109_v50 }
 0x4da   : > { %v2132_v56 = vpack.c.bf16 %v2112_v54, %v2110_v53 }
 0x4dc   : > { %v2086_v57 = vpop.f32.mrb[24].mxu1  ;;  %2203 = vmatprep.subr.bf16.mxu0 %v2132_v56 }
 0x4dd   : > { %v2088_v12 = vpop.f32.mrb[25].mxu1  ;;  %2204 = vmatpush1.bf16.msra.mxu0 %v2131_v55  ;;  %v2113_v48 = vmax.f32 %v2086_v57, 0.0  ;;  %v2159_v55 = vpop.permute.xlu0 %2158 }
 0x4de   : > { %v2090_v47 = vpop.f32.mrb[26].mxu1  ;;  %v2114_v29 = vmax.f32 %v2088_v12, 0.0 }
 0x4df   : > { %v2115_v27 = vmax.f32 %v2090_v47, 0.0  ;;  %v2092_v60 = vpop.f32.mrb[27].mxu1 }
 0x4e0   : > { %v2116_v38 = vmax.f32 %v2092_v60, 0.0 }
 0x4e1   : > { %v2133_v58 = vpack.c.bf16 %v2115_v27, %v2113_v48 }
 0x4e2   : > { %v2134_v59 = vpack.c.bf16 %v2116_v38, %v2114_v29 }
 0x4e4   : > { %v2096_v23 = vpop.f32.mrb[28].mxu1  ;;  %2205 = vmatprep.subr.bf16.mxu0 %v2134_v59 }
 0x4e5   : > { %v2098_v61 = vpop.f32.mrb[29].mxu1  ;;  %2206 = vmatpush1.bf16.msra.mxu0 %v2133_v58  ;;  %v2117_v31 = vmax.f32 %v2096_v23, 0.0  ;;  %v2163_v58 = vpop.permute.xlu1 %2162 }
 0x4e6   : > { %v2100_v0 = vpop.f32.mrb[30].mxu1  ;;  %v2118_v2 = vmax.f32 %v2098_v61, 0.0 }
 0x4e7   : > { %v2119_v63 = vmax.f32 %v2100_v0, 0.0  ;;  %v2102_v1 = vpop.f32.mrb[31].mxu1 }
 0x4e8   : > { %v2120_v3 = vmax.f32 %v2102_v1, 0.0 }
 0x4e9   : > { %v2135_v4 = vpack.c.bf16 %v2119_v63, %v2117_v31  ;;  %v2167_v63 = vpop.permute.xlu0 %2166 }
 0x4ea   : > { %v2136_v6 = vpack.c.bf16 %v2120_v3, %v2118_v2 }
 0x4ec   : > { %2207 = vmatprep.subr.bf16.mxu0 %v2136_v6 }
 0x4ed   : > { %2208 = vmatpush1.bf16.msra.mxu0 %v2135_v4 }
 0x4f0   : > { %2536 = vmatmul.mubr.msk.bf16.vlgmr.msra.gmra.mrb[20].mxu0 %vm1149_vm3, %v2647_v9 }
 0x4f1   : > { %2243 = vmatprep.mubr.bf16.mxu0 %v2704_v5 }
 0x4f8   : > { %2537 = vmatmul.mubr.msk.bf16.gmra.mrb[24].mxu0 %vm1149_vm3, %v2648_v11 }
 0x4f9   : > { %2253 = vmatprep.mubr.bf16.mxu0 %v2704_v5 }
 0x500   : > { %2538 = vmatmul.mubr.msk.bf16.gmra.mrb[28].mxu0 %vm1149_vm3, %v2649_v44 }
 0x501   : > { %2263 = vmatprep.mubr.bf16.mxu0 %v2704_v5 }
 0x508   : > { %2539 = vmatmul.mubr.msk.bf16.gmra.mrb[32].mxu0 %vm1149_vm3, %v2650_v45 }
 0x5c3   : > { %v2235_v17 = vpop.f32.mrb[20].mxu0 }
 0x5c4   : > { %v2236_v18 = vadd.f32 %v2235_v17, %v2139_v15  ;;  %v2237_v19 = vpop.f32.mrb[21].mxu0  ;;  %v2345_v17 = vpop.permute.xlu1 %2344 }
 0x5c5   : > { %v2238_v21 = vadd.f32 %v2237_v19, %v2139_v15  ;;  %v2239_v62 = vpop.f32.mrb[22].mxu0  ;;  %v2290_v15 = vld [vmem:[%s3141_s7] sm:$0xf] }
 0x5c6   : > { %v2240_v7 = vadd.f32 %v2239_v62, %v2143_v20  ;;  %v2241_v5 = vpop.f32.mrb[23].mxu0  ;;  %v2274_v24 = vmax.f32 %v2236_v18, 0.0 }
 0x5c7   : > { %v2242_v22 = vadd.f32 %v2241_v5, %v2143_v20  ;;  %v2275_v28 = vmax.f32 %v2238_v21, 0.0 }
 0x5c8   : > { %v2276_v26 = vmax.f32 %v2240_v7, 0.0 }
 0x5c9   : > { %v2277_v16 = vmax.f32 %v2242_v22, 0.0 }
 0x5ca   : > { %v2291_v32 = vpack.c.bf16 %v2276_v26, %v2274_v24 }
 0x5cb   : > { %v2292_v33 = vpack.c.bf16 %v2277_v16, %v2275_v28  ;;  %v2245_v34 = vpop.f32.mrb[24].mxu0 }
 0x5cc   : > { %v2247_v35 = vpop.f32.mrb[25].mxu0  ;;  %v2246_v10 = vadd.f32 %v2245_v34, %v2147_v30 }
 0x5cd   : > { %v2249_v39 = vpop.f32.mrb[26].mxu0  ;;  %v2248_v40 = vadd.f32 %v2247_v35, %v2147_v30  ;;  %2302 = vmatprep.subr.bf16.mxu1 %v2292_v33 }
 0x5ce   : > { %v2250_v41 = vadd.f32 %v2249_v39, %v2151_v36  ;;  %v2251_v42 = vpop.f32.mrb[27].mxu0  ;;  %2303 = vmatpush1.bf16.msra.mxu1 %v2291_v32  ;;  %v2278_v37 = vmax.f32 %v2246_v10, 0.0 }
 0x5cf   : > { %v2252_v43 = vadd.f32 %v2251_v42, %v2151_v36  ;;  %v2279_v49 = vmax.f32 %v2248_v40, 0.0 }
 0x5d0   : > { %v2280_v46 = vmax.f32 %v2250_v41, 0.0 }
 0x5d1   : > { %v2281_v8 = vmax.f32 %v2252_v43, 0.0 }
 0x5d2   : > { %v2293_v13 = vpack.c.bf16 %v2280_v46, %v2278_v37 }
 0x5d3   : > { %v2294_v50 = vpack.c.bf16 %v2281_v8, %v2279_v49  ;;  %v2255_v51 = vpop.f32.mrb[28].mxu0 }
 0x5d4   : > { %v2256_v52 = vadd.f32 %v2255_v51, %v2155_v25  ;;  %v2257_v53 = vpop.f32.mrb[29].mxu0 }
 0x5d5   : > { %v2258_v54 = vadd.f32 %v2257_v53, %v2155_v25  ;;  %v2259_v56 = vpop.f32.mrb[30].mxu0  ;;  %2304 = vmatprep.subr.bf16.mxu1 %v2294_v50 }
 0x5d6   : > { %v2260_v57 = vadd.f32 %v2259_v56, %v2159_v55  ;;  %v2261_v12 = vpop.f32.mrb[31].mxu0  ;;  %2305 = vmatpush1.bf16.msra.mxu1 %v2293_v13  ;;  %v2282_v48 = vmax.f32 %v2256_v52, 0.0 }
 0x5d7   : > { %v2262_v47 = vadd.f32 %v2261_v12, %v2159_v55  ;;  %v2283_v60 = vmax.f32 %v2258_v54, 0.0 }
 0x5d8   : > { %v2284_v27 = vmax.f32 %v2260_v57, 0.0 }
 0x5d9   : > { %v2285_v29 = vmax.f32 %v2262_v47, 0.0 }
 0x5da   : > { %v2295_v38 = vpack.c.bf16 %v2284_v27, %v2282_v48 }
 0x5db   : > { %v2296_v59 = vpack.c.bf16 %v2285_v29, %v2283_v60  ;;  %v2265_v23 = vpop.f32.mrb[32].mxu0 }
 0x5dc   : > { %v2266_v61 = vadd.f32 %v2265_v23, %v2163_v58  ;;  %v2267_v0 = vpop.f32.mrb[33].mxu0 }
 0x5dd   : > { %v2268_v31 = vadd.f32 %v2267_v0, %v2163_v58  ;;  %v2269_v1 = vpop.f32.mrb[34].mxu0  ;;  %2306 = vmatprep.subr.bf16.mxu1 %v2296_v59 }
 0x5de   : > { %v2270_v2 = vadd.f32 %v2269_v1, %v2167_v63  ;;  %v2271_v3 = vpop.f32.mrb[35].mxu0  ;;  %2307 = vmatpush1.bf16.msra.mxu1 %v2295_v38  ;;  %v2286_v6 = vmax.f32 %v2266_v61, 0.0 }
 0x5df   : > { %v2272_v4 = vadd.f32 %v2271_v3, %v2167_v63  ;;  %v2287_v11 = vmax.f32 %v2268_v31, 0.0 }
 0x5e0   : > { %v2288_v9 = vmax.f32 %v2270_v2, 0.0 }
 0x5e1   : > { %v2289_v44 = vmax.f32 %v2272_v4, 0.0 }
 0x5e2   : > { %v2297_v45 = vpack.c.bf16 %v2288_v9, %v2286_v6 }
 0x5e3   : > { %v2298_v14 = vpack.c.bf16 %v2289_v44, %v2287_v11 }
 0x5e5   : > { %2308 = vmatprep.subr.bf16.mxu1 %v2298_v14 }
 0x5e6   : > { %2309 = vmatpush1.bf16.msra.mxu1 %v2297_v45 }
 0x5e9   : > { %2540 = vmatmul.mubr.msk.bf16.vlgmr.msra.gmra.mrb[32].mxu1 %vm1149_vm3, %v2290_v15 }
 0x6bc   : > { %v2336_v18 = vpop.f32.mrb[32].mxu1 }
 0x6bd   : > { %v2338_v19 = vpop.f32.mrb[33].mxu1  ;;  %v2347_v20 = vadd.f32 %v2345_v17, %v2336_v18 }
 0x6be   : > { %v2340_v21 = vpop.f32.mrb[34].mxu1  ;;  %v2348_v62 = vadd.f32 %v2345_v17, %v2338_v19 }
 0x6bf   : > { %v2341_v7 = vpop.f32.mrb[35].mxu1 }
 0x6c0   : > { %v2351_v5 = vcombine.low %v2347_v20, %v2348_v62 }
 0x6c2   : > { %2353 = vst [vmem:[%s390_s23] sm:$0x77] %v2351_v5 }
 0x6c3 PF: > { %s19_s11 = sadd.s32 1, %s2693_s11   ;;  %s3144_s30 = smov %s2689_s10 }
 0x6c4   : > { %p16_p5 = scmp.ge.s32.totalorder %s19_s11, 4   ;;  %s3145_s10 = smov %s3147_s12 }
 0x6c6   :  { %18 = sbr.rel (!%p16_p5) target bundleno = 2 (0x2), region = 90 }

</bundles_post_ra>
